<compile_context>
chip_gen: v7x
topology: tpu7x:2x2x1
jax: 0.10.0
libtpu: 0.0.40
codegen_flags: <defaults>
</compile_context>

<pallas_src>
import functools

import jax
import jax.numpy as jnp
from jax.experimental import pallas as pl
from jax.experimental.pallas import tpu as pltpu


def _round_up(x, m):
    return ((x + m - 1) // m) * m


# --------------------------------------------------------------------------
# Pallas kernel: full TaskTokenResampler forward for one batch element
# --------------------------------------------------------------------------
def _resampler_kernel(
    x_ref,        # (1, N, Ep)       llm features, bf16, E zero-padded to Ep
    lat_ref,      # (1, Q, D)        latents (task tokens), f32
    wpi_ref,      # (Ep, D)          proj_in weight (transposed, padded), bf16
    bpi_ref,      # (1, D)           proj_in bias, f32
    ln1g_ref,     # (depth, 1, D)    attn norm1 gamma (applied to x), f32
    ln1b_ref,     # (depth, 1, D)
    ln2g_ref,     # (depth, 1, D)    attn norm2 gamma (applied to latents), f32
    ln2b_ref,     # (depth, 1, D)
    wq_ref,       # (depth, D, inner)   transposed, attention scale folded in, bf16
    wk_ref,       # (depth, D, inner)   bf16
    wv_ref,       # (depth, D, inner)   bf16
    wo_ref,       # (depth, inner, D)   transposed, bf16
    lnfg_ref,     # (depth, 1, D)    FF layernorm gamma, f32
    lnfb_ref,     # (depth, 1, D)
    wff1_ref,     # (depth, D, ff_inner)  transposed, bf16
    wff2_ref,     # (depth, ff_inner, D)  transposed, bf16
    wpo_ref,      # (D, OP)          proj_out weight (transposed, out padded), bf16
    bpo_ref,      # (1, OP)          f32 (pad columns zero)
    lnog_ref,     # (1, OP)          final layernorm gamma, f32 (pad columns zero)
    lnob_ref,     # (1, OP)
    out_ref,      # (1, Q, OP)       f32
    *,
    depth: int,
    heads: int,
    dim_head: int,
    out_dim: int,
):
    eps = 1e-5
    f32 = jnp.float32
    bf16 = jnp.bfloat16

    def layernorm(v, g, b):
        mu = jnp.mean(v, axis=-1, keepdims=True)
        var = jnp.mean((v - mu) ** 2, axis=-1, keepdims=True)
        return (v - mu) * jax.lax.rsqrt(var + eps) * g + b

    def gelu_exact(v):
        # matches torch.nn.GELU() (erf formulation)
        return 0.5 * v * (1.0 + jax.lax.erf(v / jnp.sqrt(2.0).astype(v.dtype)))

    # proj_in: (N, Ep)bf16 @ (Ep, D)bf16 -> f32  (pad columns/rows are zero => exact)
    x = jnp.dot(x_ref[0], wpi_ref[...], preferred_element_type=f32) + bpi_ref[...]
    lat = lat_ref[0]                        # (Q, D) f32

    # NOTE: depth is small here; for deep configs use lax.fori_loop or a depth grid
    # axis with per-layer weight BlockSpecs (keeps only one layer resident in VMEM).
    for l in range(depth):
        # ---------------- PerceiverAttention ----------------
        xn = layernorm(x, ln1g_ref[l], ln1b_ref[l])          # (N, D) f32
        ln_ = layernorm(lat, ln2g_ref[l], ln2b_ref[l])       # (Q, D) f32
        ln_b = ln_.astype(bf16)
        kv_in = jnp.concatenate([xn, ln_], axis=0).astype(bf16)   # (N+Q, D) bf16

        # q already carries the 1/sqrt(dim_head) attention scale (folded into wq).
        q = jnp.dot(ln_b, wq_ref[l], preferred_element_type=f32)    # (Q, inner)
        k = jnp.dot(kv_in, wk_ref[l], preferred_element_type=f32)   # (N+Q, inner)
        v = jnp.dot(kv_in, wv_ref[l], preferred_element_type=f32)   # (N+Q, inner)

        head_outs = []
        for h in range(heads):
            sl = slice(h * dim_head, (h + 1) * dim_head)
            qh = q[:, sl].astype(bf16)                       # (Q, dh)
            kh = k[:, sl].astype(bf16)                       # (N+Q, dh)
            vh = v[:, sl].astype(bf16)                       # (N+Q, dh)
            logits = jnp.einsum("qd,kd->qk", qh, kh,
                                preferred_element_type=f32)  # (Q, N+Q) f32
            logits = logits - jnp.max(logits, axis=-1, keepdims=True)
            e = jnp.exp(logits)
            p = e * pl.reciprocal(jnp.sum(e, axis=-1, keepdims=True), approx=True)
            head_outs.append(
                jnp.einsum("qk,kd->qd", p.astype(bf16), vh,
                           preferred_element_type=f32))      # (Q, dh) f32
        o = jnp.concatenate(head_outs, axis=-1)              # (Q, inner) f32
        lat = jnp.dot(o.astype(bf16), wo_ref[l],
                      preferred_element_type=f32) + lat      # (Q, D) f32

        # ---------------- FeedForward ----------------
        lf = layernorm(lat, lnfg_ref[l], lnfb_ref[l])
        hdn = jnp.dot(lf.astype(bf16), wff1_ref[l],
                      preferred_element_type=f32)            # (Q, ff_inner)
        hdn = gelu_exact(hdn)
        lat = jnp.dot(hdn.astype(bf16), wff2_ref[l],
                      preferred_element_type=f32) + lat

    # proj_out into a lane-dense padded output (pad columns of wpo/bpo are zero).
    out = jnp.dot(lat.astype(bf16), wpo_ref[...],
                  preferred_element_type=f32) + bpo_ref[...]          # (Q, OP)

    # Final LayerNorm over the true out_dim columns only (pad columns are exactly 0,
    # so the sums below only see real data; gamma/beta pads are zero -> pad output 0).
    col = jax.lax.broadcasted_iota(jnp.int32, out.shape, 1)
    mask = (col < out_dim).astype(f32)
    mu = jnp.sum(out, axis=-1, keepdims=True) / out_dim
    diff = (out - mu) * mask
    var = jnp.sum(diff * diff, axis=-1, keepdims=True) / out_dim
    out = diff * jax.lax.rsqrt(var + eps) * lnog_ref[...] + lnob_ref[...]
    out_ref[0] = out.astype(out_ref.dtype)


# --------------------------------------------------------------------------
# Wrapper (accepts PyTorch-layout f32 params; does all layout work host-side)
# --------------------------------------------------------------------------
def task_token_gen_head(llm_feats, latents, params, *, depth, heads, dim_head):
    B, N, E = llm_feats.shape
    _, Q, D = latents.shape
    inner = heads * dim_head
    out_dim = params["wpo"].shape[0]

    f32, bf16 = jnp.float32, jnp.bfloat16
    Ep = _round_up(E, 128)           # pad contraction dim of proj_in (exact: zeros)
    OP = _round_up(out_dim, 128)     # pad output features -> lane-dense stores

    # Inputs: llm_feats only feeds a matmul -> bf16 + zero-pad E. Latents stay f32
    # (residual stream / layernorm math is kept in f32).
    x_in = jnp.pad(llm_feats, ((0, 0), (0, 0), (0, Ep - E))).astype(bf16)
    lat_in = latents.astype(f32)

    wkv = params["wkv"]                       # (depth, 2*inner, D)
    wk = wkv[:, :inner, :]
    wv = wkv[:, inner:, :]
    scale2 = 1.0 / (dim_head ** 0.5)          # (dh**-0.25 on q)*(dh**-0.25 on k)

    pad_o = OP - out_dim
    weights = dict(
        wpi=jnp.pad(params["wpi"].T, ((0, Ep - E), (0, 0))).astype(bf16),     # (Ep, D)
        bpi=params["bpi"].astype(f32),                                        # (1, D)
        ln1g=params["ln1g"].astype(f32), ln1b=params["ln1b"].astype(f32),
        ln2g=params["ln2g"].astype(f32), ln2b=params["ln2b"].astype(f32),
        wq=(jnp.transpose(params["wq"], (0, 2, 1)) * scale2).astype(bf16),    # (d, D, inner)
        wk=jnp.transpose(wk, (0, 2, 1)).astype(bf16),                         # (d, D, inner)
        wv=jnp.transpose(wv, (0, 2, 1)).astype(bf16),                         # (d, D, inner)
        wo=jnp.transpose(params["wo"], (0, 2, 1)).astype(bf16),               # (d, inner, D)
        lnfg=params["lnfg"].astype(f32), lnfb=params["lnfb"].astype(f32),
        wff1=jnp.transpose(params["wff1"], (0, 2, 1)).astype(bf16),           # (d, D, F)
        wff2=jnp.transpose(params["wff2"], (0, 2, 1)).astype(bf16),           # (d, F, D)
        wpo=jnp.pad(params["wpo"].T, ((0, 0), (0, pad_o))).astype(bf16),      # (D, OP)
        bpo=jnp.pad(params["bpo"], ((0, 0), (0, pad_o))).astype(f32),         # (1, OP)
        lnog=jnp.pad(params["lnog"], ((0, 0), (0, pad_o))).astype(f32),
        lnob=jnp.pad(params["lnob"], ((0, 0), (0, pad_o))).astype(f32),
    )
    order = [
        "wpi", "bpi", "ln1g", "ln1b", "ln2g", "ln2b",
        "wq", "wk", "wv", "wo", "lnfg", "lnfb", "wff1", "wff2",
        "wpo", "bpo", "lnog", "lnob",
    ]
    wlist = [weights[n] for n in order]

    def full_spec(arr):
        nd = arr.ndim
        return pl.BlockSpec(arr.shape, lambda b, _nd=nd: (0,) * _nd)

    in_specs = [
        pl.BlockSpec((1, N, Ep), lambda b: (b, 0, 0)),
        pl.BlockSpec((1, Q, D), lambda b: (b, 0, 0)),
    ] + [full_spec(w) for w in wlist]
    out_spec = pl.BlockSpec((1, Q, OP), lambda b: (b, 0, 0))

    kernel = functools.partial(
        _resampler_kernel, depth=depth, heads=heads, dim_head=dim_head, out_dim=out_dim
    )

    out = pl.pallas_call(
        kernel,
        out_shape=jax.ShapeDtypeStruct((B, Q, OP), f32),
        grid_spec=pltpu.PrefetchScalarGridSpec(
            num_scalar_prefetch=0,
            grid=(B,),
            in_specs=in_specs,
            out_specs=out_spec,
        ),
        compiler_params=pltpu.CompilerParams(
            dimension_semantics=("parallel",),       # independent batch elements
            vmem_limit_bytes=32 * 1024 * 1024,       # re-budget for production shapes
        ),
    )(x_in, lat_in, *wlist)
    return out[:, :, :out_dim]


# --------------------------------------------------------------------------
# Pure-JAX reference (same math, f32, original PyTorch weight layout)
# --------------------------------------------------------------------------
def reference_forward(llm_feats, latents, p, *, depth, heads, dim_head):
    eps = 1e-5

    def layernorm(v, g, b):
        mu = jnp.mean(v, axis=-1, keepdims=True)
        var = jnp.mean((v - mu) ** 2, axis=-1, keepdims=True)
        return (v - mu) * jax.lax.rsqrt(var + eps) * g + b

    inner = heads * dim_head
    scale = 1.0 / (dim_head ** 0.25)
    x = jnp.einsum("bne,de->bnd", llm_feats, p["wpi"]) + p["bpi"]
    lat = latents
    for l in range(depth):
        xn = layernorm(x, p["ln1g"][l], p["ln1b"][l])
        ln = layernorm(lat, p["ln2g"][l], p["ln2b"][l])
        q = jnp.einsum("bqd,id->bqi", ln, p["wq"][l])
        kv_in = jnp.concatenate([xn, ln], axis=1)
        kv = jnp.einsum("bkd,id->bki", kv_in, p["wkv"][l])
        k, v = kv[..., :inner], kv[..., inner:]
        B, Q, _ = q.shape
        L = kv_in.shape[1]
        qh = q.reshape(B, Q, heads, dim_head).transpose(0, 2, 1, 3)
        kh = k.reshape(B, L, heads, dim_head).transpose(0, 2, 1, 3)
        vh = v.reshape(B, L, heads, dim_head).transpose(0, 2, 1, 3)
        w = jnp.einsum("bhqd,bhkd->bhqk", qh * scale, kh * scale)
        w = jax.nn.softmax(w, axis=-1)
        o = jnp.einsum("bhqk,bhkd->bhqd", w, vh)
        o = o.transpose(0, 2, 1, 3).reshape(B, Q, inner)
        o = jnp.einsum("bqi,di->bqd", o, p["wo"][l])
        lat = o + lat
        lf = layernorm(lat, p["lnfg"][l], p["lnfb"][l])
        h = jnp.einsum("bqd,fd->bqf", lf, p["wff1"][l])
        h = 0.5 * h * (1.0 + jax.lax.erf(h / jnp.sqrt(2.0)))
        lat = jnp.einsum("bqf,df->bqd", h, p["wff2"][l]) + lat
    out = jnp.einsum("bqd,od->bqo", lat, p["wpo"]) + p["bpo"]
    return layernorm(out, p["lnog"], p["lnob"])


# --------------------------------------------------------------------------
# Main
# --------------------------------------------------------------------------
if __name__ == "__main__":
    # Small config consistent with the module's constructor.
    proj_config = dict(
        output_dim=32, depth=2, dim_head=16, num_heads=2, num_tokens=4, ff_mult=4
    )
    llm_hidden_size = 32

    D = proj_config["output_dim"]
    depth = proj_config["depth"]
    dim_head = proj_config["dim_head"]
    heads = proj_config["num_heads"]
    Q = proj_config["num_tokens"]
    ff_mult = proj_config["ff_mult"]
    E = llm_hidden_size
    inner = heads * dim_head
    ff_inner = D * ff_mult
    out_dim = D

    B, N = 2, 8

    key = jax.random.PRNGKey(0)
    keys = jax.random.split(key, 16)

    def nrm(k, shape, s=0.02):
        return jax.random.normal(k, shape, dtype=jnp.float32) * s

    params = {
        "wpi": nrm(keys[0], (D, E)),
        "bpi": nrm(keys[1], (1, D)),
        "ln1g": jnp.ones((depth, 1, D), jnp.float32),
        "ln1b": jnp.zeros((depth, 1, D), jnp.float32),
        "ln2g": jnp.ones((depth, 1, D), jnp.float32),
        "ln2b": jnp.zeros((depth, 1, D), jnp.float32),
        "wq": nrm(keys[2], (depth, inner, D)),
        "wkv": nrm(keys[3], (depth, 2 * inner, D)),
        "wo": nrm(keys[4], (depth, D, inner)),
        "lnfg": jnp.ones((depth, 1, D), jnp.float32),
        "lnfb": jnp.zeros((depth, 1, D), jnp.float32),
        "wff1": nrm(keys[5], (depth, ff_inner, D)),
        "wff2": nrm(keys[6], (depth, D, ff_inner)),
        "wpo": nrm(keys[7], (out_dim, D)),
        "bpo": nrm(keys[8], (1, out_dim)),
        "lnog": jnp.ones((1, out_dim), jnp.float32),
        "lnob": jnp.zeros((1, out_dim), jnp.float32),
    }

    llm_feats = jax.random.normal(keys[9], (B, N, E), dtype=jnp.float32)
    latents = jax.random.normal(keys[10], (B, Q, D), dtype=jnp.float32)

    gen_feats = task_token_gen_head(
        llm_feats, latents, params, depth=depth, heads=heads, dim_head=dim_head
    )
    gen_feats = jax.block_until_ready(gen_feats)

    ref = reference_forward(
        llm_feats, latents, params, depth=depth, heads=heads, dim_head=dim_head
    )
    assert gen_feats.shape == (B, Q, out_dim)
    # Slightly looser tolerance than pure f32: matmuls run with bf16 MXU inputs.
    assert jnp.allclose(gen_feats, ref, atol=3e-2, rtol=3e-2)

    print("KERNEL_OK")
</pallas_src>

<mosaic_0001>
module attributes {stable_mosaic.version = 11 : i64} {
  func.func @_resampler_kernel(%arg0: i32, %arg1: memref<1x8x128xbf16, #tpu.memory_space<vmem>>, %arg2: memref<1x4x32xf32, #tpu.memory_space<vmem>>, %arg3: memref<128x32xbf16, #tpu.memory_space<vmem>>, %arg4: memref<1x32xf32, #tpu.memory_space<vmem>>, %arg5: memref<2x1x32xf32, #tpu.memory_space<vmem>>, %arg6: memref<2x1x32xf32, #tpu.memory_space<vmem>>, %arg7: memref<2x1x32xf32, #tpu.memory_space<vmem>>, %arg8: memref<2x1x32xf32, #tpu.memory_space<vmem>>, %arg9: memref<2x32x32xbf16, #tpu.memory_space<vmem>>, %arg10: memref<2x32x32xbf16, #tpu.memory_space<vmem>>, %arg11: memref<2x32x32xbf16, #tpu.memory_space<vmem>>, %arg12: memref<2x32x32xbf16, #tpu.memory_space<vmem>>, %arg13: memref<2x1x32xf32, #tpu.memory_space<vmem>>, %arg14: memref<2x1x32xf32, #tpu.memory_space<vmem>>, %arg15: memref<2x32x128xbf16, #tpu.memory_space<vmem>>, %arg16: memref<2x128x32xbf16, #tpu.memory_space<vmem>>, %arg17: memref<32x128xbf16, #tpu.memory_space<vmem>>, %arg18: memref<1x128xf32, #tpu.memory_space<vmem>>, %arg19: memref<1x128xf32, #tpu.memory_space<vmem>>, %arg20: memref<1x128xf32, #tpu.memory_space<vmem>>, %arg21: memref<1x4x128xf32, #tpu.memory_space<vmem>>) attributes {dimension_semantics = [#tpu.dimension_semantics<parallel>], iteration_bounds = array<i64: 2>, scalar_prefetch = 0 : i64, scratch_operands = 0 : i64, tpu.core_type = #tpu.core_type<tc>, window_params = [{transform_indices = @transform_0, window_bounds = array<i64: 1, 8, 128>}, {transform_indices = @transform_1, window_bounds = array<i64: 1, 4, 32>}, {pipeline_mode = #tpu.pipeline_mode<synchronous>, transform_indices = @transform_2, window_bounds = array<i64: 128, 32>}, {pipeline_mode = #tpu.pipeline_mode<synchronous>, transform_indices = @transform_3, window_bounds = array<i64: 1, 32>}, {pipeline_mode = #tpu.pipeline_mode<synchronous>, transform_indices = @transform_4, window_bounds = array<i64: 2, 1, 32>}, {pipeline_mode = #tpu.pipeline_mode<synchronous>, transform_indices = @transform_5, window_bounds = array<i64: 2, 1, 32>}, {pipeline_mode = #tpu.pipeline_mode<synchronous>, transform_indices = @transform_6, window_bounds = array<i64: 2, 1, 32>}, {pipeline_mode = #tpu.pipeline_mode<synchronous>, transform_indices = @transform_7, window_bounds = array<i64: 2, 1, 32>}, {pipeline_mode = #tpu.pipeline_mode<synchronous>, transform_indices = @transform_8, window_bounds = array<i64: 2, 32, 32>}, {pipeline_mode = #tpu.pipeline_mode<synchronous>, transform_indices = @transform_9, window_bounds = array<i64: 2, 32, 32>}, {pipeline_mode = #tpu.pipeline_mode<synchronous>, transform_indices = @transform_10, window_bounds = array<i64: 2, 32, 32>}, {pipeline_mode = #tpu.pipeline_mode<synchronous>, transform_indices = @transform_11, window_bounds = array<i64: 2, 32, 32>}, {pipeline_mode = #tpu.pipeline_mode<synchronous>, transform_indices = @transform_12, window_bounds = array<i64: 2, 1, 32>}, {pipeline_mode = #tpu.pipeline_mode<synchronous>, transform_indices = @transform_13, window_bounds = array<i64: 2, 1, 32>}, {pipeline_mode = #tpu.pipeline_mode<synchronous>, transform_indices = @transform_14, window_bounds = array<i64: 2, 32, 128>}, {pipeline_mode = #tpu.pipeline_mode<synchronous>, transform_indices = @transform_15, window_bounds = array<i64: 2, 128, 32>}, {pipeline_mode = #tpu.pipeline_mode<synchronous>, transform_indices = @transform_16, window_bounds = array<i64: 32, 128>}, {pipeline_mode = #tpu.pipeline_mode<synchronous>, transform_indices = @transform_17, window_bounds = array<i64: 1, 128>}, {pipeline_mode = #tpu.pipeline_mode<synchronous>, transform_indices = @transform_18, window_bounds = array<i64: 1, 128>}, {pipeline_mode = #tpu.pipeline_mode<synchronous>, transform_indices = @transform_19, window_bounds = array<i64: 1, 128>}, {transform_indices = @transform_20, window_bounds = array<i64: 1, 4, 128>}]} {
    %c0 = arith.constant 0 : index
    %c0_0 = arith.constant 0 : index
    %c0_1 = arith.constant 0 : index
    %0 = vector.load %arg1[%c0, %c0_0, %c0_1] : memref<1x8x128xbf16, #tpu.memory_space<vmem>>, vector<1x8x128xbf16>
    %1 = vector.shape_cast %0 : vector<1x8x128xbf16> to vector<8x128xbf16>
    %c0_2 = arith.constant 0 : index
    %c0_3 = arith.constant 0 : index
    %2 = vector.load %arg3[%c0_2, %c0_3] : memref<128x32xbf16, #tpu.memory_space<vmem>>, vector<128x32xbf16>
    %cst = arith.constant dense<0.000000e+00> : vector<8x32xf32>
    %3 = tpu.matmul %1, %2, %cst {dimension_numbers = #tpu.dot_dimension_numbers<[1], [0], [0], [1], [0, 0, 1, 1], [], []>} : vector<8x128xbf16>, vector<128x32xbf16>, vector<8x32xf32> -> vector<8x32xf32>
    %c0_4 = arith.constant 0 : index
    %c0_5 = arith.constant 0 : index
    %4 = vector.load %arg4[%c0_4, %c0_5] : memref<1x32xf32, #tpu.memory_space<vmem>>, vector<1x32xf32>
    %5 = vector.broadcast %4 : vector<1x32xf32> to vector<8x32xf32>
    %6 = arith.addf %3, %5 : vector<8x32xf32>
    %c0_6 = arith.constant 0 : index
    %c0_7 = arith.constant 0 : index
    %c0_8 = arith.constant 0 : index
    %7 = vector.load %arg2[%c0_6, %c0_7, %c0_8] : memref<1x4x32xf32, #tpu.memory_space<vmem>>, vector<1x4x32xf32>
    %8 = vector.shape_cast %7 : vector<1x4x32xf32> to vector<4x32xf32>
    %c0_9 = arith.constant 0 : index
    %c0_10 = arith.constant 0 : index
    %c0_11 = arith.constant 0 : index
    %9 = vector.load %arg5[%c0_9, %c0_10, %c0_11] : memref<2x1x32xf32, #tpu.memory_space<vmem>>, vector<1x1x32xf32>
    %10 = vector.shape_cast %9 : vector<1x1x32xf32> to vector<1x32xf32>
    %c0_12 = arith.constant 0 : index
    %c0_13 = arith.constant 0 : index
    %c0_14 = arith.constant 0 : index
    %11 = vector.load %arg6[%c0_12, %c0_13, %c0_14] : memref<2x1x32xf32, #tpu.memory_space<vmem>>, vector<1x1x32xf32>
    %12 = vector.shape_cast %11 : vector<1x1x32xf32> to vector<1x32xf32>
    %cst_15 = arith.constant dense<0.000000e+00> : vector<8xf32>
    %13 = vector.multi_reduction <add>, %6, %cst_15 [1] : vector<8x32xf32> to vector<8xf32>
    %14 = vector.shape_cast %13 : vector<8xf32> to vector<8x1xf32>
    %cst_16 = arith.constant 3.200000e+01 : f32
    %15 = vector.broadcast %cst_16 : f32 to vector<8x1xf32>
    %16 = arith.divf %14, %15 : vector<8x1xf32>
    %17 = vector.broadcast %16 : vector<8x1xf32> to vector<8x32xf32>
    %18 = arith.subf %6, %17 : vector<8x32xf32>
    %19 = arith.mulf %18, %18 : vector<8x32xf32>
    %cst_17 = arith.constant dense<0.000000e+00> : vector<8xf32>
    %20 = vector.multi_reduction <add>, %19, %cst_17 [1] : vector<8x32xf32> to vector<8xf32>
    %21 = vector.shape_cast %20 : vector<8xf32> to vector<8x1xf32>
    %cst_18 = arith.constant 3.200000e+01 : f32
    %22 = vector.broadcast %cst_18 : f32 to vector<8x1xf32>
    %23 = arith.divf %21, %22 : vector<8x1xf32>
    %24 = vector.broadcast %16 : vector<8x1xf32> to vector<8x32xf32>
    %25 = arith.subf %6, %24 : vector<8x32xf32>
    %cst_19 = arith.constant 9.99999974E-6 : f32
    %26 = vector.broadcast %cst_19 : f32 to vector<8x1xf32>
    %27 = arith.addf %23, %26 : vector<8x1xf32>
    %28 = math.rsqrt %27 : vector<8x1xf32>
    %29 = vector.broadcast %28 : vector<8x1xf32> to vector<8x32xf32>
    %30 = arith.mulf %25, %29 : vector<8x32xf32>
    %31 = vector.broadcast %10 : vector<1x32xf32> to vector<8x32xf32>
    %32 = arith.mulf %30, %31 : vector<8x32xf32>
    %33 = vector.broadcast %12 : vector<1x32xf32> to vector<8x32xf32>
    %34 = arith.addf %32, %33 : vector<8x32xf32>
    %c0_20 = arith.constant 0 : index
    %c0_21 = arith.constant 0 : index
    %c0_22 = arith.constant 0 : index
    %35 = vector.load %arg7[%c0_20, %c0_21, %c0_22] : memref<2x1x32xf32, #tpu.memory_space<vmem>>, vector<1x1x32xf32>
    %36 = vector.shape_cast %35 : vector<1x1x32xf32> to vector<1x32xf32>
    %c0_23 = arith.constant 0 : index
    %c0_24 = arith.constant 0 : index
    %c0_25 = arith.constant 0 : index
    %37 = vector.load %arg8[%c0_23, %c0_24, %c0_25] : memref<2x1x32xf32, #tpu.memory_space<vmem>>, vector<1x1x32xf32>
    %38 = vector.shape_cast %37 : vector<1x1x32xf32> to vector<1x32xf32>
    %cst_26 = arith.constant dense<0.000000e+00> : vector<4xf32>
    %39 = vector.multi_reduction <add>, %8, %cst_26 [1] : vector<4x32xf32> to vector<4xf32>
    %40 = vector.shape_cast %39 : vector<4xf32> to vector<4x1xf32>
    %cst_27 = arith.constant 3.200000e+01 : f32
    %41 = vector.broadcast %cst_27 : f32 to vector<4x1xf32>
    %42 = arith.divf %40, %41 : vector<4x1xf32>
    %43 = vector.broadcast %42 : vector<4x1xf32> to vector<4x32xf32>
    %44 = arith.subf %8, %43 : vector<4x32xf32>
    %45 = arith.mulf %44, %44 : vector<4x32xf32>
    %cst_28 = arith.constant dense<0.000000e+00> : vector<4xf32>
    %46 = vector.multi_reduction <add>, %45, %cst_28 [1] : vector<4x32xf32> to vector<4xf32>
    %47 = vector.shape_cast %46 : vector<4xf32> to vector<4x1xf32>
    %cst_29 = arith.constant 3.200000e+01 : f32
    %48 = vector.broadcast %cst_29 : f32 to vector<4x1xf32>
    %49 = arith.divf %47, %48 : vector<4x1xf32>
    %50 = vector.broadcast %42 : vector<4x1xf32> to vector<4x32xf32>
    %51 = arith.subf %8, %50 : vector<4x32xf32>
    %cst_30 = arith.constant 9.99999974E-6 : f32
    %52 = vector.broadcast %cst_30 : f32 to vector<4x1xf32>
    %53 = arith.addf %49, %52 : vector<4x1xf32>
    %54 = math.rsqrt %53 : vector<4x1xf32>
    %55 = vector.broadcast %54 : vector<4x1xf32> to vector<4x32xf32>
    %56 = arith.mulf %51, %55 : vector<4x32xf32>
    %57 = vector.broadcast %36 : vector<1x32xf32> to vector<4x32xf32>
    %58 = arith.mulf %56, %57 : vector<4x32xf32>
    %59 = vector.broadcast %38 : vector<1x32xf32> to vector<4x32xf32>
    %60 = arith.addf %58, %59 : vector<4x32xf32>
    %61 = arith.truncf %60 : vector<4x32xf32> to vector<4x32xbf16>
    %62 = tpu.concatenate %34, %60 in 0 : vector<8x32xf32>, vector<4x32xf32> -> vector<12x32xf32>
    %63 = arith.truncf %62 : vector<12x32xf32> to vector<12x32xbf16>
    %c0_31 = arith.constant 0 : index
    %c0_32 = arith.constant 0 : index
    %c0_33 = arith.constant 0 : index
    %64 = vector.load %arg9[%c0_31, %c0_32, %c0_33] : memref<2x32x32xbf16, #tpu.memory_space<vmem>>, vector<1x32x32xbf16>
    %65 = vector.shape_cast %64 : vector<1x32x32xbf16> to vector<32x32xbf16>
    %cst_34 = arith.constant dense<0.000000e+00> : vector<4x32xf32>
    %66 = tpu.matmul %61, %65, %cst_34 {dimension_numbers = #tpu.dot_dimension_numbers<[1], [0], [0], [1], [0, 0, 1, 1], [], []>} : vector<4x32xbf16>, vector<32x32xbf16>, vector<4x32xf32> -> vector<4x32xf32>
    %c0_35 = arith.constant 0 : index
    %c0_36 = arith.constant 0 : index
    %c0_37 = arith.constant 0 : index
    %67 = vector.load %arg10[%c0_35, %c0_36, %c0_37] : memref<2x32x32xbf16, #tpu.memory_space<vmem>>, vector<1x32x32xbf16>
    %68 = vector.shape_cast %67 : vector<1x32x32xbf16> to vector<32x32xbf16>
    %cst_38 = arith.constant dense<0.000000e+00> : vector<12x32xf32>
    %69 = tpu.matmul %63, %68, %cst_38 {dimension_numbers = #tpu.dot_dimension_numbers<[1], [0], [0], [1], [0, 0, 1, 1], [], []>} : vector<12x32xbf16>, vector<32x32xbf16>, vector<12x32xf32> -> vector<12x32xf32>
    %c0_39 = arith.constant 0 : index
    %c0_40 = arith.constant 0 : index
    %c0_41 = arith.constant 0 : index
    %70 = vector.load %arg11[%c0_39, %c0_40, %c0_41] : memref<2x32x32xbf16, #tpu.memory_space<vmem>>, vector<1x32x32xbf16>
    %71 = vector.shape_cast %70 : vector<1x32x32xbf16> to vector<32x32xbf16>
    %cst_42 = arith.constant dense<0.000000e+00> : vector<12x32xf32>
    %72 = tpu.matmul %63, %71, %cst_42 {dimension_numbers = #tpu.dot_dimension_numbers<[1], [0], [0], [1], [0, 0, 1, 1], [], []>} : vector<12x32xbf16>, vector<32x32xbf16>, vector<12x32xf32> -> vector<12x32xf32>
    %73 = vector.extract_strided_slice %66 {offsets = [0, 0], sizes = [4, 16], strides = [1, 1]} : vector<4x32xf32> to vector<4x16xf32>
    %74 = arith.truncf %73 : vector<4x16xf32> to vector<4x16xbf16>
    %75 = vector.extract_strided_slice %69 {offsets = [0, 0], sizes = [12, 16], strides = [1, 1]} : vector<12x32xf32> to vector<12x16xf32>
    %76 = arith.truncf %75 : vector<12x16xf32> to vector<12x16xbf16>
    %77 = vector.extract_strided_slice %72 {offsets = [0, 0], sizes = [12, 16], strides = [1, 1]} : vector<12x32xf32> to vector<12x16xf32>
    %78 = arith.truncf %77 : vector<12x16xf32> to vector<12x16xbf16>
    "tpu.trace_start"() <{level = 10 : i32, message = "qd,kd->qk"}> : () -> ()
    %cst_43 = arith.constant dense<0.000000e+00> : vector<4x12xf32>
    %79 = tpu.matmul %74, %76, %cst_43 {dimension_numbers = #tpu.dot_dimension_numbers<[1], [1], [0], [0], [0, 0, 1, 0], [], []>} : vector<4x16xbf16>, vector<12x16xbf16>, vector<4x12xf32> -> vector<4x12xf32>
    "tpu.trace_stop"() : () -> ()
    %cst_44 = arith.constant dense<0xFF800000> : vector<4xf32>
    %80 = vector.multi_reduction <maximumf>, %79, %cst_44 [1] : vector<4x12xf32> to vector<4xf32>
    %81 = vector.shape_cast %80 : vector<4xf32> to vector<4x1xf32>
    %82 = vector.broadcast %81 : vector<4x1xf32> to vector<4x12xf32>
    %83 = arith.subf %79, %82 : vector<4x12xf32>
    %84 = math.exp %83 : vector<4x12xf32>
    %cst_45 = arith.constant dense<0.000000e+00> : vector<4xf32>
    %85 = vector.multi_reduction <add>, %84, %cst_45 [1] : vector<4x12xf32> to vector<4xf32>
    %86 = vector.shape_cast %85 : vector<4xf32> to vector<4x1xf32>
    %87 = tpu.reciprocal %86 {approx = true} : vector<4x1xf32> -> vector<4x1xf32>
    %88 = vector.broadcast %87 : vector<4x1xf32> to vector<4x12xf32>
    %89 = arith.mulf %84, %88 : vector<4x12xf32>
    %90 = arith.truncf %89 : vector<4x12xf32> to vector<4x12xbf16>
    "tpu.trace_start"() <{level = 10 : i32, message = "qk,kd->qd"}> : () -> ()
    %cst_46 = arith.constant dense<0.000000e+00> : vector<4x16xf32>
    %91 = tpu.matmul %90, %78, %cst_46 {dimension_numbers = #tpu.dot_dimension_numbers<[1], [0], [0], [1], [0, 0, 1, 1], [], []>} : vector<4x12xbf16>, vector<12x16xbf16>, vector<4x16xf32> -> vector<4x16xf32>
    "tpu.trace_stop"() : () -> ()
    %92 = vector.extract_strided_slice %66 {offsets = [0, 16], sizes = [4, 16], strides = [1, 1]} : vector<4x32xf32> to vector<4x16xf32>
    %93 = arith.truncf %92 : vector<4x16xf32> to vector<4x16xbf16>
    %94 = vector.extract_strided_slice %69 {offsets = [0, 16], sizes = [12, 16], strides = [1, 1]} : vector<12x32xf32> to vector<12x16xf32>
    %95 = arith.truncf %94 : vector<12x16xf32> to vector<12x16xbf16>
    %96 = vector.extract_strided_slice %72 {offsets = [0, 16], sizes = [12, 16], strides = [1, 1]} : vector<12x32xf32> to vector<12x16xf32>
    %97 = arith.truncf %96 : vector<12x16xf32> to vector<12x16xbf16>
    "tpu.trace_start"() <{level = 10 : i32, message = "qd,kd->qk"}> : () -> ()
    %cst_47 = arith.constant dense<0.000000e+00> : vector<4x12xf32>
    %98 = tpu.matmul %93, %95, %cst_47 {dimension_numbers = #tpu.dot_dimension_numbers<[1], [1], [0], [0], [0, 0, 1, 0], [], []>} : vector<4x16xbf16>, vector<12x16xbf16>, vector<4x12xf32> -> vector<4x12xf32>
    "tpu.trace_stop"() : () -> ()
    %cst_48 = arith.constant dense<0xFF800000> : vector<4xf32>
    %99 = vector.multi_reduction <maximumf>, %98, %cst_48 [1] : vector<4x12xf32> to vector<4xf32>
    %100 = vector.shape_cast %99 : vector<4xf32> to vector<4x1xf32>
    %101 = vector.broadcast %100 : vector<4x1xf32> to vector<4x12xf32>
    %102 = arith.subf %98, %101 : vector<4x12xf32>
    %103 = math.exp %102 : vector<4x12xf32>
    %cst_49 = arith.constant dense<0.000000e+00> : vector<4xf32>
    %104 = vector.multi_reduction <add>, %103, %cst_49 [1] : vector<4x12xf32> to vector<4xf32>
    %105 = vector.shape_cast %104 : vector<4xf32> to vector<4x1xf32>
    %106 = tpu.reciprocal %105 {approx = true} : vector<4x1xf32> -> vector<4x1xf32>
    %107 = vector.broadcast %106 : vector<4x1xf32> to vector<4x12xf32>
    %108 = arith.mulf %103, %107 : vector<4x12xf32>
    %109 = arith.truncf %108 : vector<4x12xf32> to vector<4x12xbf16>
    "tpu.trace_start"() <{level = 10 : i32, message = "qk,kd->qd"}> : () -> ()
    %cst_50 = arith.constant dense<0.000000e+00> : vector<4x16xf32>
    %110 = tpu.matmul %109, %97, %cst_50 {dimension_numbers = #tpu.dot_dimension_numbers<[1], [0], [0], [1], [0, 0, 1, 1], [], []>} : vector<4x12xbf16>, vector<12x16xbf16>, vector<4x16xf32> -> vector<4x16xf32>
    "tpu.trace_stop"() : () -> ()
    %111 = tpu.concatenate %91, %110 in 1 : vector<4x16xf32>, vector<4x16xf32> -> vector<4x32xf32>
    %112 = arith.truncf %111 : vector<4x32xf32> to vector<4x32xbf16>
    %c0_51 = arith.constant 0 : index
    %c0_52 = arith.constant 0 : index
    %c0_53 = arith.constant 0 : index
    %113 = vector.load %arg12[%c0_51, %c0_52, %c0_53] : memref<2x32x32xbf16, #tpu.memory_space<vmem>>, vector<1x32x32xbf16>
    %114 = vector.shape_cast %113 : vector<1x32x32xbf16> to vector<32x32xbf16>
    %cst_54 = arith.constant dense<0.000000e+00> : vector<4x32xf32>
    %115 = tpu.matmul %112, %114, %cst_54 {dimension_numbers = #tpu.dot_dimension_numbers<[1], [0], [0], [1], [0, 0, 1, 1], [], []>} : vector<4x32xbf16>, vector<32x32xbf16>, vector<4x32xf32> -> vector<4x32xf32>
    %116 = arith.addf %115, %8 : vector<4x32xf32>
    %c0_55 = arith.constant 0 : index
    %c0_56 = arith.constant 0 : index
    %c0_57 = arith.constant 0 : index
    %117 = vector.load %arg13[%c0_55, %c0_56, %c0_57] : memref<2x1x32xf32, #tpu.memory_space<vmem>>, vector<1x1x32xf32>
    %118 = vector.shape_cast %117 : vector<1x1x32xf32> to vector<1x32xf32>
    %c0_58 = arith.constant 0 : index
    %c0_59 = arith.constant 0 : index
    %c0_60 = arith.constant 0 : index
    %119 = vector.load %arg14[%c0_58, %c0_59, %c0_60] : memref<2x1x32xf32, #tpu.memory_space<vmem>>, vector<1x1x32xf32>
    %120 = vector.shape_cast %119 : vector<1x1x32xf32> to vector<1x32xf32>
    %cst_61 = arith.constant dense<0.000000e+00> : vector<4xf32>
    %121 = vector.multi_reduction <add>, %116, %cst_61 [1] : vector<4x32xf32> to vector<4xf32>
    %122 = vector.shape_cast %121 : vector<4xf32> to vector<4x1xf32>
    %cst_62 = arith.constant 3.200000e+01 : f32
    %123 = vector.broadcast %cst_62 : f32 to vector<4x1xf32>
    %124 = arith.divf %122, %123 : vector<4x1xf32>
    %125 = vector.broadcast %124 : vector<4x1xf32> to vector<4x32xf32>
    %126 = arith.subf %116, %125 : vector<4x32xf32>
    %127 = arith.mulf %126, %126 : vector<4x32xf32>
    %cst_63 = arith.constant dense<0.000000e+00> : vector<4xf32>
    %128 = vector.multi_reduction <add>, %127, %cst_63 [1] : vector<4x32xf32> to vector<4xf32>
    %129 = vector.shape_cast %128 : vector<4xf32> to vector<4x1xf32>
    %cst_64 = arith.constant 3.200000e+01 : f32
    %130 = vector.broadcast %cst_64 : f32 to vector<4x1xf32>
    %131 = arith.divf %129, %130 : vector<4x1xf32>
    %132 = vector.broadcast %124 : vector<4x1xf32> to vector<4x32xf32>
    %133 = arith.subf %116, %132 : vector<4x32xf32>
    %cst_65 = arith.constant 9.99999974E-6 : f32
    %134 = vector.broadcast %cst_65 : f32 to vector<4x1xf32>
    %135 = arith.addf %131, %134 : vector<4x1xf32>
    %136 = math.rsqrt %135 : vector<4x1xf32>
    %137 = vector.broadcast %136 : vector<4x1xf32> to vector<4x32xf32>
    %138 = arith.mulf %133, %137 : vector<4x32xf32>
    %139 = vector.broadcast %118 : vector<1x32xf32> to vector<4x32xf32>
    %140 = arith.mulf %138, %139 : vector<4x32xf32>
    %141 = vector.broadcast %120 : vector<1x32xf32> to vector<4x32xf32>
    %142 = arith.addf %140, %141 : vector<4x32xf32>
    %143 = arith.truncf %142 : vector<4x32xf32> to vector<4x32xbf16>
    %c0_66 = arith.constant 0 : index
    %c0_67 = arith.constant 0 : index
    %c0_68 = arith.constant 0 : index
    %144 = vector.load %arg15[%c0_66, %c0_67, %c0_68] : memref<2x32x128xbf16, #tpu.memory_space<vmem>>, vector<1x32x128xbf16>
    %145 = vector.shape_cast %144 : vector<1x32x128xbf16> to vector<32x128xbf16>
    %cst_69 = arith.constant dense<0.000000e+00> : vector<4x128xf32>
    %146 = tpu.matmul %143, %145, %cst_69 {dimension_numbers = #tpu.dot_dimension_numbers<[1], [0], [0], [1], [0, 0, 1, 1], [], []>} : vector<4x32xbf16>, vector<32x128xbf16>, vector<4x128xf32> -> vector<4x128xf32>
    %cst_70 = arith.constant 5.000000e-01 : f32
    %147 = vector.broadcast %cst_70 : f32 to vector<4x128xf32>
    %148 = arith.mulf %147, %146 : vector<4x128xf32>
    %cst_71 = arith.constant 2.000000e+00 : f32
    %149 = math.sqrt %cst_71 : f32
    %150 = vector.broadcast %149 : f32 to vector<4x128xf32>
    %151 = arith.divf %146, %150 : vector<4x128xf32>
    %152 = math.erf %151 : vector<4x128xf32>
    %cst_72 = arith.constant 1.000000e+00 : f32
    %153 = vector.broadcast %cst_72 : f32 to vector<4x128xf32>
    %154 = arith.addf %153, %152 : vector<4x128xf32>
    %155 = arith.mulf %148, %154 : vector<4x128xf32>
    %156 = arith.truncf %155 : vector<4x128xf32> to vector<4x128xbf16>
    %c0_73 = arith.constant 0 : index
    %c0_74 = arith.constant 0 : index
    %c0_75 = arith.constant 0 : index
    %157 = vector.load %arg16[%c0_73, %c0_74, %c0_75] : memref<2x128x32xbf16, #tpu.memory_space<vmem>>, vector<1x128x32xbf16>
    %158 = vector.shape_cast %157 : vector<1x128x32xbf16> to vector<128x32xbf16>
    %cst_76 = arith.constant dense<0.000000e+00> : vector<4x32xf32>
    %159 = tpu.matmul %156, %158, %cst_76 {dimension_numbers = #tpu.dot_dimension_numbers<[1], [0], [0], [1], [0, 0, 1, 1], [], []>} : vector<4x128xbf16>, vector<128x32xbf16>, vector<4x32xf32> -> vector<4x32xf32>
    %160 = arith.addf %159, %116 : vector<4x32xf32>
    %c1 = arith.constant 1 : index
    %c0_77 = arith.constant 0 : index
    %c0_78 = arith.constant 0 : index
    %161 = vector.load %arg5[%c1, %c0_77, %c0_78] : memref<2x1x32xf32, #tpu.memory_space<vmem>>, vector<1x1x32xf32>
    %162 = vector.shape_cast %161 : vector<1x1x32xf32> to vector<1x32xf32>
    %c1_79 = arith.constant 1 : index
    %c0_80 = arith.constant 0 : index
    %c0_81 = arith.constant 0 : index
    %163 = vector.load %arg6[%c1_79, %c0_80, %c0_81] : memref<2x1x32xf32, #tpu.memory_space<vmem>>, vector<1x1x32xf32>
    %164 = vector.shape_cast %163 : vector<1x1x32xf32> to vector<1x32xf32>
    %cst_82 = arith.constant dense<0.000000e+00> : vector<8xf32>
    %165 = vector.multi_reduction <add>, %6, %cst_82 [1] : vector<8x32xf32> to vector<8xf32>
    %166 = vector.shape_cast %165 : vector<8xf32> to vector<8x1xf32>
    %cst_83 = arith.constant 3.200000e+01 : f32
    %167 = vector.broadcast %cst_83 : f32 to vector<8x1xf32>
    %168 = arith.divf %166, %167 : vector<8x1xf32>
    %169 = vector.broadcast %168 : vector<8x1xf32> to vector<8x32xf32>
    %170 = arith.subf %6, %169 : vector<8x32xf32>
    %171 = arith.mulf %170, %170 : vector<8x32xf32>
    %cst_84 = arith.constant dense<0.000000e+00> : vector<8xf32>
    %172 = vector.multi_reduction <add>, %171, %cst_84 [1] : vector<8x32xf32> to vector<8xf32>
    %173 = vector.shape_cast %172 : vector<8xf32> to vector<8x1xf32>
    %cst_85 = arith.constant 3.200000e+01 : f32
    %174 = vector.broadcast %cst_85 : f32 to vector<8x1xf32>
    %175 = arith.divf %173, %174 : vector<8x1xf32>
    %176 = vector.broadcast %168 : vector<8x1xf32> to vector<8x32xf32>
    %177 = arith.subf %6, %176 : vector<8x32xf32>
    %cst_86 = arith.constant 9.99999974E-6 : f32
    %178 = vector.broadcast %cst_86 : f32 to vector<8x1xf32>
    %179 = arith.addf %175, %178 : vector<8x1xf32>
    %180 = math.rsqrt %179 : vector<8x1xf32>
    %181 = vector.broadcast %180 : vector<8x1xf32> to vector<8x32xf32>
    %182 = arith.mulf %177, %181 : vector<8x32xf32>
    %183 = vector.broadcast %162 : vector<1x32xf32> to vector<8x32xf32>
    %184 = arith.mulf %182, %183 : vector<8x32xf32>
    %185 = vector.broadcast %164 : vector<1x32xf32> to vector<8x32xf32>
    %186 = arith.addf %184, %185 : vector<8x32xf32>
    %c1_87 = arith.constant 1 : index
    %c0_88 = arith.constant 0 : index
    %c0_89 = arith.constant 0 : index
    %187 = vector.load %arg7[%c1_87, %c0_88, %c0_89] : memref<2x1x32xf32, #tpu.memory_space<vmem>>, vector<1x1x32xf32>
    %188 = vector.shape_cast %187 : vector<1x1x32xf32> to vector<1x32xf32>
    %c1_90 = arith.constant 1 : index
    %c0_91 = arith.constant 0 : index
    %c0_92 = arith.constant 0 : index
    %189 = vector.load %arg8[%c1_90, %c0_91, %c0_92] : memref<2x1x32xf32, #tpu.memory_space<vmem>>, vector<1x1x32xf32>
    %190 = vector.shape_cast %189 : vector<1x1x32xf32> to vector<1x32xf32>
    %cst_93 = arith.constant dense<0.000000e+00> : vector<4xf32>
    %191 = vector.multi_reduction <add>, %160, %cst_93 [1] : vector<4x32xf32> to vector<4xf32>
    %192 = vector.shape_cast %191 : vector<4xf32> to vector<4x1xf32>
    %cst_94 = arith.constant 3.200000e+01 : f32
    %193 = vector.broadcast %cst_94 : f32 to vector<4x1xf32>
    %194 = arith.divf %192, %193 : vector<4x1xf32>
    %195 = vector.broadcast %194 : vector<4x1xf32> to vector<4x32xf32>
    %196 = arith.subf %160, %195 : vector<4x32xf32>
    %197 = arith.mulf %196, %196 : vector<4x32xf32>
    %cst_95 = arith.constant dense<0.000000e+00> : vector<4xf32>
    %198 = vector.multi_reduction <add>, %197, %cst_95 [1] : vector<4x32xf32> to vector<4xf32>
    %199 = vector.shape_cast %198 : vector<4xf32> to vector<4x1xf32>
    %cst_96 = arith.constant 3.200000e+01 : f32
    %200 = vector.broadcast %cst_96 : f32 to vector<4x1xf32>
    %201 = arith.divf %199, %200 : vector<4x1xf32>
    %202 = vector.broadcast %194 : vector<4x1xf32> to vector<4x32xf32>
    %203 = arith.subf %160, %202 : vector<4x32xf32>
    %cst_97 = arith.constant 9.99999974E-6 : f32
    %204 = vector.broadcast %cst_97 : f32 to vector<4x1xf32>
    %205 = arith.addf %201, %204 : vector<4x1xf32>
    %206 = math.rsqrt %205 : vector<4x1xf32>
    %207 = vector.broadcast %206 : vector<4x1xf32> to vector<4x32xf32>
    %208 = arith.mulf %203, %207 : vector<4x32xf32>
    %209 = vector.broadcast %188 : vector<1x32xf32> to vector<4x32xf32>
    %210 = arith.mulf %208, %209 : vector<4x32xf32>
    %211 = vector.broadcast %190 : vector<1x32xf32> to vector<4x32xf32>
    %212 = arith.addf %210, %211 : vector<4x32xf32>
    %213 = arith.truncf %212 : vector<4x32xf32> to vector<4x32xbf16>
    %214 = tpu.concatenate %186, %212 in 0 : vector<8x32xf32>, vector<4x32xf32> -> vector<12x32xf32>
    %215 = arith.truncf %214 : vector<12x32xf32> to vector<12x32xbf16>
    %c1_98 = arith.constant 1 : index
    %c0_99 = arith.constant 0 : index
    %c0_100 = arith.constant 0 : index
    %216 = vector.load %arg9[%c1_98, %c0_99, %c0_100] : memref<2x32x32xbf16, #tpu.memory_space<vmem>>, vector<1x32x32xbf16>
    %217 = vector.shape_cast %216 : vector<1x32x32xbf16> to vector<32x32xbf16>
    %cst_101 = arith.constant dense<0.000000e+00> : vector<4x32xf32>
    %218 = tpu.matmul %213, %217, %cst_101 {dimension_numbers = #tpu.dot_dimension_numbers<[1], [0], [0], [1], [0, 0, 1, 1], [], []>} : vector<4x32xbf16>, vector<32x32xbf16>, vector<4x32xf32> -> vector<4x32xf32>
    %c1_102 = arith.constant 1 : index
    %c0_103 = arith.constant 0 : index
    %c0_104 = arith.constant 0 : index
    %219 = vector.load %arg10[%c1_102, %c0_103, %c0_104] : memref<2x32x32xbf16, #tpu.memory_space<vmem>>, vector<1x32x32xbf16>
    %220 = vector.shape_cast %219 : vector<1x32x32xbf16> to vector<32x32xbf16>
    %cst_105 = arith.constant dense<0.000000e+00> : vector<12x32xf32>
    %221 = tpu.matmul %215, %220, %cst_105 {dimension_numbers = #tpu.dot_dimension_numbers<[1], [0], [0], [1], [0, 0, 1, 1], [], []>} : vector<12x32xbf16>, vector<32x32xbf16>, vector<12x32xf32> -> vector<12x32xf32>
    %c1_106 = arith.constant 1 : index
    %c0_107 = arith.constant 0 : index
    %c0_108 = arith.constant 0 : index
    %222 = vector.load %arg11[%c1_106, %c0_107, %c0_108] : memref<2x32x32xbf16, #tpu.memory_space<vmem>>, vector<1x32x32xbf16>
    %223 = vector.shape_cast %222 : vector<1x32x32xbf16> to vector<32x32xbf16>
    %cst_109 = arith.constant dense<0.000000e+00> : vector<12x32xf32>
    %224 = tpu.matmul %215, %223, %cst_109 {dimension_numbers = #tpu.dot_dimension_numbers<[1], [0], [0], [1], [0, 0, 1, 1], [], []>} : vector<12x32xbf16>, vector<32x32xbf16>, vector<12x32xf32> -> vector<12x32xf32>
    %225 = vector.extract_strided_slice %218 {offsets = [0, 0], sizes = [4, 16], strides = [1, 1]} : vector<4x32xf32> to vector<4x16xf32>
    %226 = arith.truncf %225 : vector<4x16xf32> to vector<4x16xbf16>
    %227 = vector.extract_strided_slice %221 {offsets = [0, 0], sizes = [12, 16], strides = [1, 1]} : vector<12x32xf32> to vector<12x16xf32>
    %228 = arith.truncf %227 : vector<12x16xf32> to vector<12x16xbf16>
    %229 = vector.extract_strided_slice %224 {offsets = [0, 0], sizes = [12, 16], strides = [1, 1]} : vector<12x32xf32> to vector<12x16xf32>
    %230 = arith.truncf %229 : vector<12x16xf32> to vector<12x16xbf16>
    "tpu.trace_start"() <{level = 10 : i32, message = "qd,kd->qk"}> : () -> ()
    %cst_110 = arith.constant dense<0.000000e+00> : vector<4x12xf32>
    %231 = tpu.matmul %226, %228, %cst_110 {dimension_numbers = #tpu.dot_dimension_numbers<[1], [1], [0], [0], [0, 0, 1, 0], [], []>} : vector<4x16xbf16>, vector<12x16xbf16>, vector<4x12xf32> -> vector<4x12xf32>
    "tpu.trace_stop"() : () -> ()
    %cst_111 = arith.constant dense<0xFF800000> : vector<4xf32>
    %232 = vector.multi_reduction <maximumf>, %231, %cst_111 [1] : vector<4x12xf32> to vector<4xf32>
    %233 = vector.shape_cast %232 : vector<4xf32> to vector<4x1xf32>
    %234 = vector.broadcast %233 : vector<4x1xf32> to vector<4x12xf32>
    %235 = arith.subf %231, %234 : vector<4x12xf32>
    %236 = math.exp %235 : vector<4x12xf32>
    %cst_112 = arith.constant dense<0.000000e+00> : vector<4xf32>
    %237 = vector.multi_reduction <add>, %236, %cst_112 [1] : vector<4x12xf32> to vector<4xf32>
    %238 = vector.shape_cast %237 : vector<4xf32> to vector<4x1xf32>
    %239 = tpu.reciprocal %238 {approx = true} : vector<4x1xf32> -> vector<4x1xf32>
    %240 = vector.broadcast %239 : vector<4x1xf32> to vector<4x12xf32>
    %241 = arith.mulf %236, %240 : vector<4x12xf32>
    %242 = arith.truncf %241 : vector<4x12xf32> to vector<4x12xbf16>
    "tpu.trace_start"() <{level = 10 : i32, message = "qk,kd->qd"}> : () -> ()
    %cst_113 = arith.constant dense<0.000000e+00> : vector<4x16xf32>
    %243 = tpu.matmul %242, %230, %cst_113 {dimension_numbers = #tpu.dot_dimension_numbers<[1], [0], [0], [1], [0, 0, 1, 1], [], []>} : vector<4x12xbf16>, vector<12x16xbf16>, vector<4x16xf32> -> vector<4x16xf32>
    "tpu.trace_stop"() : () -> ()
    %244 = vector.extract_strided_slice %218 {offsets = [0, 16], sizes = [4, 16], strides = [1, 1]} : vector<4x32xf32> to vector<4x16xf32>
    %245 = arith.truncf %244 : vector<4x16xf32> to vector<4x16xbf16>
    %246 = vector.extract_strided_slice %221 {offsets = [0, 16], sizes = [12, 16], strides = [1, 1]} : vector<12x32xf32> to vector<12x16xf32>
    %247 = arith.truncf %246 : vector<12x16xf32> to vector<12x16xbf16>
    %248 = vector.extract_strided_slice %224 {offsets = [0, 16], sizes = [12, 16], strides = [1, 1]} : vector<12x32xf32> to vector<12x16xf32>
    %249 = arith.truncf %248 : vector<12x16xf32> to vector<12x16xbf16>
    "tpu.trace_start"() <{level = 10 : i32, message = "qd,kd->qk"}> : () -> ()
    %cst_114 = arith.constant dense<0.000000e+00> : vector<4x12xf32>
    %250 = tpu.matmul %245, %247, %cst_114 {dimension_numbers = #tpu.dot_dimension_numbers<[1], [1], [0], [0], [0, 0, 1, 0], [], []>} : vector<4x16xbf16>, vector<12x16xbf16>, vector<4x12xf32> -> vector<4x12xf32>
    "tpu.trace_stop"() : () -> ()
    %cst_115 = arith.constant dense<0xFF800000> : vector<4xf32>
    %251 = vector.multi_reduction <maximumf>, %250, %cst_115 [1] : vector<4x12xf32> to vector<4xf32>
    %252 = vector.shape_cast %251 : vector<4xf32> to vector<4x1xf32>
    %253 = vector.broadcast %252 : vector<4x1xf32> to vector<4x12xf32>
    %254 = arith.subf %250, %253 : vector<4x12xf32>
    %255 = math.exp %254 : vector<4x12xf32>
    %cst_116 = arith.constant dense<0.000000e+00> : vector<4xf32>
    %256 = vector.multi_reduction <add>, %255, %cst_116 [1] : vector<4x12xf32> to vector<4xf32>
    %257 = vector.shape_cast %256 : vector<4xf32> to vector<4x1xf32>
    %258 = tpu.reciprocal %257 {approx = true} : vector<4x1xf32> -> vector<4x1xf32>
    %259 = vector.broadcast %258 : vector<4x1xf32> to vector<4x12xf32>
    %260 = arith.mulf %255, %259 : vector<4x12xf32>
    %261 = arith.truncf %260 : vector<4x12xf32> to vector<4x12xbf16>
    "tpu.trace_start"() <{level = 10 : i32, message = "qk,kd->qd"}> : () -> ()
    %cst_117 = arith.constant dense<0.000000e+00> : vector<4x16xf32>
    %262 = tpu.matmul %261, %249, %cst_117 {dimension_numbers = #tpu.dot_dimension_numbers<[1], [0], [0], [1], [0, 0, 1, 1], [], []>} : vector<4x12xbf16>, vector<12x16xbf16>, vector<4x16xf32> -> vector<4x16xf32>
    "tpu.trace_stop"() : () -> ()
    %263 = tpu.concatenate %243, %262 in 1 : vector<4x16xf32>, vector<4x16xf32> -> vector<4x32xf32>
    %264 = arith.truncf %263 : vector<4x32xf32> to vector<4x32xbf16>
    %c1_118 = arith.constant 1 : index
    %c0_119 = arith.constant 0 : index
    %c0_120 = arith.constant 0 : index
    %265 = vector.load %arg12[%c1_118, %c0_119, %c0_120] : memref<2x32x32xbf16, #tpu.memory_space<vmem>>, vector<1x32x32xbf16>
    %266 = vector.shape_cast %265 : vector<1x32x32xbf16> to vector<32x32xbf16>
    %cst_121 = arith.constant dense<0.000000e+00> : vector<4x32xf32>
    %267 = tpu.matmul %264, %266, %cst_121 {dimension_numbers = #tpu.dot_dimension_numbers<[1], [0], [0], [1], [0, 0, 1, 1], [], []>} : vector<4x32xbf16>, vector<32x32xbf16>, vector<4x32xf32> -> vector<4x32xf32>
    %268 = arith.addf %267, %160 : vector<4x32xf32>
    %c1_122 = arith.constant 1 : index
    %c0_123 = arith.constant 0 : index
    %c0_124 = arith.constant 0 : index
    %269 = vector.load %arg13[%c1_122, %c0_123, %c0_124] : memref<2x1x32xf32, #tpu.memory_space<vmem>>, vector<1x1x32xf32>
    %270 = vector.shape_cast %269 : vector<1x1x32xf32> to vector<1x32xf32>
    %c1_125 = arith.constant 1 : index
    %c0_126 = arith.constant 0 : index
    %c0_127 = arith.constant 0 : index
    %271 = vector.load %arg14[%c1_125, %c0_126, %c0_127] : memref<2x1x32xf32, #tpu.memory_space<vmem>>, vector<1x1x32xf32>
    %272 = vector.shape_cast %271 : vector<1x1x32xf32> to vector<1x32xf32>
    %cst_128 = arith.constant dense<0.000000e+00> : vector<4xf32>
    %273 = vector.multi_reduction <add>, %268, %cst_128 [1] : vector<4x32xf32> to vector<4xf32>
    %274 = vector.shape_cast %273 : vector<4xf32> to vector<4x1xf32>
    %cst_129 = arith.constant 3.200000e+01 : f32
    %275 = vector.broadcast %cst_129 : f32 to vector<4x1xf32>
    %276 = arith.divf %274, %275 : vector<4x1xf32>
    %277 = vector.broadcast %276 : vector<4x1xf32> to vector<4x32xf32>
    %278 = arith.subf %268, %277 : vector<4x32xf32>
    %279 = arith.mulf %278, %278 : vector<4x32xf32>
    %cst_130 = arith.constant dense<0.000000e+00> : vector<4xf32>
    %280 = vector.multi_reduction <add>, %279, %cst_130 [1] : vector<4x32xf32> to vector<4xf32>
    %281 = vector.shape_cast %280 : vector<4xf32> to vector<4x1xf32>
    %cst_131 = arith.constant 3.200000e+01 : f32
    %282 = vector.broadcast %cst_131 : f32 to vector<4x1xf32>
    %283 = arith.divf %281, %282 : vector<4x1xf32>
    %284 = vector.broadcast %276 : vector<4x1xf32> to vector<4x32xf32>
    %285 = arith.subf %268, %284 : vector<4x32xf32>
    %cst_132 = arith.constant 9.99999974E-6 : f32
    %286 = vector.broadcast %cst_132 : f32 to vector<4x1xf32>
    %287 = arith.addf %283, %286 : vector<4x1xf32>
    %288 = math.rsqrt %287 : vector<4x1xf32>
    %289 = vector.broadcast %288 : vector<4x1xf32> to vector<4x32xf32>
    %290 = arith.mulf %285, %289 : vector<4x32xf32>
    %291 = vector.broadcast %270 : vector<1x32xf32> to vector<4x32xf32>
    %292 = arith.mulf %290, %291 : vector<4x32xf32>
    %293 = vector.broadcast %272 : vector<1x32xf32> to vector<4x32xf32>
    %294 = arith.addf %292, %293 : vector<4x32xf32>
    %295 = arith.truncf %294 : vector<4x32xf32> to vector<4x32xbf16>
    %c1_133 = arith.constant 1 : index
    %c0_134 = arith.constant 0 : index
    %c0_135 = arith.constant 0 : index
    %296 = vector.load %arg15[%c1_133, %c0_134, %c0_135] : memref<2x32x128xbf16, #tpu.memory_space<vmem>>, vector<1x32x128xbf16>
    %297 = vector.shape_cast %296 : vector<1x32x128xbf16> to vector<32x128xbf16>
    %cst_136 = arith.constant dense<0.000000e+00> : vector<4x128xf32>
    %298 = tpu.matmul %295, %297, %cst_136 {dimension_numbers = #tpu.dot_dimension_numbers<[1], [0], [0], [1], [0, 0, 1, 1], [], []>} : vector<4x32xbf16>, vector<32x128xbf16>, vector<4x128xf32> -> vector<4x128xf32>
    %cst_137 = arith.constant 5.000000e-01 : f32
    %299 = vector.broadcast %cst_137 : f32 to vector<4x128xf32>
    %300 = arith.mulf %299, %298 : vector<4x128xf32>
    %cst_138 = arith.constant 2.000000e+00 : f32
    %301 = math.sqrt %cst_138 : f32
    %302 = vector.broadcast %301 : f32 to vector<4x128xf32>
    %303 = arith.divf %298, %302 : vector<4x128xf32>
    %304 = math.erf %303 : vector<4x128xf32>
    %cst_139 = arith.constant 1.000000e+00 : f32
    %305 = vector.broadcast %cst_139 : f32 to vector<4x128xf32>
    %306 = arith.addf %305, %304 : vector<4x128xf32>
    %307 = arith.mulf %300, %306 : vector<4x128xf32>
    %308 = arith.truncf %307 : vector<4x128xf32> to vector<4x128xbf16>
    %c1_140 = arith.constant 1 : index
    %c0_141 = arith.constant 0 : index
    %c0_142 = arith.constant 0 : index
    %309 = vector.load %arg16[%c1_140, %c0_141, %c0_142] : memref<2x128x32xbf16, #tpu.memory_space<vmem>>, vector<1x128x32xbf16>
    %310 = vector.shape_cast %309 : vector<1x128x32xbf16> to vector<128x32xbf16>
    %cst_143 = arith.constant dense<0.000000e+00> : vector<4x32xf32>
    %311 = tpu.matmul %308, %310, %cst_143 {dimension_numbers = #tpu.dot_dimension_numbers<[1], [0], [0], [1], [0, 0, 1, 1], [], []>} : vector<4x128xbf16>, vector<128x32xbf16>, vector<4x32xf32> -> vector<4x32xf32>
    %312 = arith.addf %311, %268 : vector<4x32xf32>
    %313 = arith.truncf %312 : vector<4x32xf32> to vector<4x32xbf16>
    %c0_144 = arith.constant 0 : index
    %c0_145 = arith.constant 0 : index
    %314 = vector.load %arg17[%c0_144, %c0_145] : memref<32x128xbf16, #tpu.memory_space<vmem>>, vector<32x128xbf16>
    %cst_146 = arith.constant dense<0.000000e+00> : vector<4x128xf32>
    %315 = tpu.matmul %313, %314, %cst_146 {dimension_numbers = #tpu.dot_dimension_numbers<[1], [0], [0], [1], [0, 0, 1, 1], [], []>} : vector<4x32xbf16>, vector<32x128xbf16>, vector<4x128xf32> -> vector<4x128xf32>
    %c0_147 = arith.constant 0 : index
    %c0_148 = arith.constant 0 : index
    %316 = vector.load %arg18[%c0_147, %c0_148] : memref<1x128xf32, #tpu.memory_space<vmem>>, vector<1x128xf32>
    %317 = vector.broadcast %316 : vector<1x128xf32> to vector<4x128xf32>
    %318 = arith.addf %315, %317 : vector<4x128xf32>
    %319 = tpu.iota {dimensions = array<i32: 1>} : vector<4x128xi32>
    %c32_i32 = arith.constant 32 : i32
    %320 = vector.broadcast %c32_i32 : i32 to vector<4x128xi32>
    %321 = arith.cmpi slt, %319, %320 : vector<4x128xi32>
    %322 = arith.extui %321 : vector<4x128xi1> to vector<4x128xi32>
    %323 = arith.sitofp %322 : vector<4x128xi32> to vector<4x128xf32>
    %cst_149 = arith.constant dense<0.000000e+00> : vector<4xf32>
    %324 = vector.multi_reduction <add>, %318, %cst_149 [1] : vector<4x128xf32> to vector<4xf32>
    %325 = vector.shape_cast %324 : vector<4xf32> to vector<4x1xf32>
    %cst_150 = arith.constant 3.200000e+01 : f32
    %326 = vector.broadcast %cst_150 : f32 to vector<4x1xf32>
    %327 = arith.divf %325, %326 : vector<4x1xf32>
    %328 = vector.broadcast %327 : vector<4x1xf32> to vector<4x128xf32>
    %329 = arith.subf %318, %328 : vector<4x128xf32>
    %330 = arith.mulf %329, %323 : vector<4x128xf32>
    %331 = arith.mulf %330, %330 : vector<4x128xf32>
    %cst_151 = arith.constant dense<0.000000e+00> : vector<4xf32>
    %332 = vector.multi_reduction <add>, %331, %cst_151 [1] : vector<4x128xf32> to vector<4xf32>
    %333 = vector.shape_cast %332 : vector<4xf32> to vector<4x1xf32>
    %cst_152 = arith.constant 3.200000e+01 : f32
    %334 = vector.broadcast %cst_152 : f32 to vector<4x1xf32>
    %335 = arith.divf %333, %334 : vector<4x1xf32>
    %cst_153 = arith.constant 9.99999974E-6 : f32
    %336 = vector.broadcast %cst_153 : f32 to vector<4x1xf32>
    %337 = arith.addf %335, %336 : vector<4x1xf32>
    %338 = math.rsqrt %337 : vector<4x1xf32>
    %339 = vector.broadcast %338 : vector<4x1xf32> to vector<4x128xf32>
    %340 = arith.mulf %330, %339 : vector<4x128xf32>
    %c0_154 = arith.constant 0 : index
    %c0_155 = arith.constant 0 : index
    %341 = vector.load %arg19[%c0_154, %c0_155] : memref<1x128xf32, #tpu.memory_space<vmem>>, vector<1x128xf32>
    %342 = vector.broadcast %341 : vector<1x128xf32> to vector<4x128xf32>
    %343 = arith.mulf %340, %342 : vector<4x128xf32>
    %c0_156 = arith.constant 0 : index
    %c0_157 = arith.constant 0 : index
    %344 = vector.load %arg20[%c0_156, %c0_157] : memref<1x128xf32, #tpu.memory_space<vmem>>, vector<1x128xf32>
    %345 = vector.broadcast %344 : vector<1x128xf32> to vector<4x128xf32>
    %346 = arith.addf %343, %345 : vector<4x128xf32>
    %c0_158 = arith.constant 0 : index
    %c0_159 = arith.constant 0 : index
    %c0_160 = arith.constant 0 : index
    %347 = vector.load %arg21[%c0_158, %c0_159, %c0_160] : memref<1x4x128xf32, #tpu.memory_space<vmem>>, vector<1x4x128xf32>
    %348 = vector.shape_cast %347 : vector<1x4x128xf32> to vector<4x128xf32>
    %349 = vector.shape_cast %346 : vector<4x128xf32> to vector<1x4x128xf32>
    tpu.vector_store %arg21[%c0_158, %c0_159, %c0_160], %349 {strides = array<i32>} : memref<1x4x128xf32, #tpu.memory_space<vmem>>, vector<1x4x128xf32>,
    return
  }
  func.func @transform_0(%arg0: i32) -> (i32, i32, i32) {
    %c0_i32 = arith.constant 0 : i32
    %c0_i32_0 = arith.constant 0 : i32
    %c0_i32_1 = arith.constant 0 : i32
    return %arg0, %c0_i32, %c0_i32_0 : i32, i32, i32
  }
  func.func @transform_1(%arg0: i32) -> (i32, i32, i32) {
    %c0_i32 = arith.constant 0 : i32
    %c0_i32_0 = arith.constant 0 : i32
    %c0_i32_1 = arith.constant 0 : i32
    return %arg0, %c0_i32, %c0_i32_0 : i32, i32, i32
  }
  func.func @transform_2(%arg0: i32) -> (i32, i32) {
    %c0_i32 = arith.constant 0 : i32
    %c0_i32_0 = arith.constant 0 : i32
    %c0_i32_1 = arith.constant 0 : i32
    return %c0_i32, %c0_i32_0 : i32, i32
  }
  func.func @transform_3(%arg0: i32) -> (i32, i32) {
    %c0_i32 = arith.constant 0 : i32
    %c0_i32_0 = arith.constant 0 : i32
    %c0_i32_1 = arith.constant 0 : i32
    return %c0_i32, %c0_i32_0 : i32, i32
  }
  func.func @transform_4(%arg0: i32) -> (i32, i32, i32) {
    %c0_i32 = arith.constant 0 : i32
    %c0_i32_0 = arith.constant 0 : i32
    %c0_i32_1 = arith.constant 0 : i32
    %c0_i32_2 = arith.constant 0 : i32
    return %c0_i32, %c0_i32_0, %c0_i32_1 : i32, i32, i32
  }
  func.func @transform_5(%arg0: i32) -> (i32, i32, i32) {
    %c0_i32 = arith.constant 0 : i32
    %c0_i32_0 = arith.constant 0 : i32
    %c0_i32_1 = arith.constant 0 : i32
    %c0_i32_2 = arith.constant 0 : i32
    return %c0_i32, %c0_i32_0, %c0_i32_1 : i32, i32, i32
  }
  func.func @transform_6(%arg0: i32) -> (i32, i32, i32) {
    %c0_i32 = arith.constant 0 : i32
    %c0_i32_0 = arith.constant 0 : i32
    %c0_i32_1 = arith.constant 0 : i32
    %c0_i32_2 = arith.constant 0 : i32
    return %c0_i32, %c0_i32_0, %c0_i32_1 : i32, i32, i32
  }
  func.func @transform_7(%arg0: i32) -> (i32, i32, i32) {
    %c0_i32 = arith.constant 0 : i32
    %c0_i32_0 = arith.constant 0 : i32
    %c0_i32_1 = arith.constant 0 : i32
    %c0_i32_2 = arith.constant 0 : i32
    return %c0_i32, %c0_i32_0, %c0_i32_1 : i32, i32, i32
  }
  func.func @transform_8(%arg0: i32) -> (i32, i32, i32) {
    %c0_i32 = arith.constant 0 : i32
    %c0_i32_0 = arith.constant 0 : i32
    %c0_i32_1 = arith.constant 0 : i32
    %c0_i32_2 = arith.constant 0 : i32
    return %c0_i32, %c0_i32_0, %c0_i32_1 : i32, i32, i32
  }
  func.func @transform_9(%arg0: i32) -> (i32, i32, i32) {
    %c0_i32 = arith.constant 0 : i32
    %c0_i32_0 = arith.constant 0 : i32
    %c0_i32_1 = arith.constant 0 : i32
    %c0_i32_2 = arith.constant 0 : i32
    return %c0_i32, %c0_i32_0, %c0_i32_1 : i32, i32, i32
  }
  func.func @transform_10(%arg0: i32) -> (i32, i32, i32) {
    %c0_i32 = arith.constant 0 : i32
    %c0_i32_0 = arith.constant 0 : i32
    %c0_i32_1 = arith.constant 0 : i32
    %c0_i32_2 = arith.constant 0 : i32
    return %c0_i32, %c0_i32_0, %c0_i32_1 : i32, i32, i32
  }
  func.func @transform_11(%arg0: i32) -> (i32, i32, i32) {
    %c0_i32 = arith.constant 0 : i32
    %c0_i32_0 = arith.constant 0 : i32
    %c0_i32_1 = arith.constant 0 : i32
    %c0_i32_2 = arith.constant 0 : i32
    return %c0_i32, %c0_i32_0, %c0_i32_1 : i32, i32, i32
  }
  func.func @transform_12(%arg0: i32) -> (i32, i32, i32) {
    %c0_i32 = arith.constant 0 : i32
    %c0_i32_0 = arith.constant 0 : i32
    %c0_i32_1 = arith.constant 0 : i32
    %c0_i32_2 = arith.constant 0 : i32
    return %c0_i32, %c0_i32_0, %c0_i32_1 : i32, i32, i32
  }
  func.func @transform_13(%arg0: i32) -> (i32, i32, i32) {
    %c0_i32 = arith.constant 0 : i32
    %c0_i32_0 = arith.constant 0 : i32
    %c0_i32_1 = arith.constant 0 : i32
    %c0_i32_2 = arith.constant 0 : i32
    return %c0_i32, %c0_i32_0, %c0_i32_1 : i32, i32, i32
  }
  func.func @transform_14(%arg0: i32) -> (i32, i32, i32) {
    %c0_i32 = arith.constant 0 : i32
    %c0_i32_0 = arith.constant 0 : i32
    %c0_i32_1 = arith.constant 0 : i32
    %c0_i32_2 = arith.constant 0 : i32
    return %c0_i32, %c0_i32_0, %c0_i32_1 : i32, i32, i32
  }
  func.func @transform_15(%arg0: i32) -> (i32, i32, i32) {
    %c0_i32 = arith.constant 0 : i32
    %c0_i32_0 = arith.constant 0 : i32
    %c0_i32_1 = arith.constant 0 : i32
    %c0_i32_2 = arith.constant 0 : i32
    return %c0_i32, %c0_i32_0, %c0_i32_1 : i32, i32, i32
  }
  func.func @transform_16(%arg0: i32) -> (i32, i32) {
    %c0_i32 = arith.constant 0 : i32
    %c0_i32_0 = arith.constant 0 : i32
    %c0_i32_1 = arith.constant 0 : i32
    return %c0_i32, %c0_i32_0 : i32, i32
  }
  func.func @transform_17(%arg0: i32) -> (i32, i32) {
    %c0_i32 = arith.constant 0 : i32
    %c0_i32_0 = arith.constant 0 : i32
    %c0_i32_1 = arith.constant 0 : i32
    return %c0_i32, %c0_i32_0 : i32, i32
  }
  func.func @transform_18(%arg0: i32) -> (i32, i32) {
    %c0_i32 = arith.constant 0 : i32
    %c0_i32_0 = arith.constant 0 : i32
    %c0_i32_1 = arith.constant 0 : i32
    return %c0_i32, %c0_i32_0 : i32, i32
  }
  func.func @transform_19(%arg0: i32) -> (i32, i32) {
    %c0_i32 = arith.constant 0 : i32
    %c0_i32_0 = arith.constant 0 : i32
    %c0_i32_1 = arith.constant 0 : i32
    return %c0_i32, %c0_i32_0 : i32, i32
  }
  func.func @transform_20(%arg0: i32) -> (i32, i32, i32) {
    %c0_i32 = arith.constant 0 : i32
    %c0_i32_0 = arith.constant 0 : i32
    %c0_i32_1 = arith.constant 0 : i32
    return %arg0, %c0_i32, %c0_i32_0 : i32, i32, i32
  }
}

</mosaic_0001>

<bundles_post_ra>
// kernel: tpu_custom_call.1
= control target key start
LH: loop header
LB: loop body
LE: loop exit
PB: predicated region body
PF: predicated region fallthrough
CT: control target
= control target key end

     0   :  { %s3563_s0 = inlined_call_operand.vmem [shape: bf16[2,8,128], index: 0, kind: input, shape index: {}]   ;;  %s3564_s1 = inlined_call_operand.vmem [shape: f32[2,4,32], index: 1, kind: input, shape index: {}]   ;;  %s3565_s2 = inlined_call_operand.vmem [shape: bf16[128,32], index: 2, kind: input, shape index: {}]   ;;  %s3566_s3 = inlined_call_operand.vmem [shape: f32[1,32], index: 3, kind: input, shape index: {}]   ;;  %s3567_s4 = inlined_call_operand.vmem [shape: f32[2,1,32], index: 4, kind: input, shape index: {}]   ;;  %s3568_s5 = inlined_call_operand.vmem [shape: f32[2,1,32], index: 5, kind: input, shape index: {}]   ;;  %s3569_s6 = inlined_call_operand.vmem [shape: f32[2,1,32], index: 6, kind: input, shape index: {}]   ;;  %s3570_s7 = inlined_call_operand.vmem [shape: f32[2,1,32], index: 7, kind: input, shape index: {}]   ;;  %s3571_s8 = inlined_call_operand.vmem [shape: bf16[2,32,32], index: 8, kind: input, shape index: {}]   ;;  %s3572_s9 = inlined_call_operand.vmem [shape: bf16[2,32,32], index: 9, kind: input, shape index: {}]   ;;  %s3573_s10 = inlined_call_operand.vmem [shape: bf16[2,32,32], index: 10, kind: input, shape index: {}]   ;;  %s3574_s11 = inlined_call_operand.vmem [shape: bf16[2,32,32], index: 11, kind: input, shape index: {}]   ;;  %s3575_s12 = inlined_call_operand.vmem [shape: f32[2,1,32], index: 12, kind: input, shape index: {}]   ;;  %s3576_s13 = inlined_call_operand.vmem [shape: f32[2,1,32], index: 13, kind: input, shape index: {}]   ;;  %s3577_s14 = inlined_call_operand.vmem [shape: bf16[2,32,128], index: 14, kind: input, shape index: {}]   ;;  %s3578_s15 = inlined_call_operand.vmem [shape: bf16[2,128,32], index: 15, kind: input, shape index: {}]   ;;  %s3579_s16 = inlined_call_operand.vmem [shape: bf16[32,128], index: 16, kind: input, shape index: {}]   ;;  %s3580_s17 = inlined_call_operand.vmem [shape: f32[1,128], index: 17, kind: input, shape index: {}]   ;;  %s3581_s18 = inlined_call_operand.vmem [shape: f32[1,128], index: 18, kind: input, shape index: {}]   ;;  %s3582_s19 = inlined_call_operand.vmem [shape: f32[1,128], index: 19, kind: input, shape index: {}]   ;;  %s3583_s20 = inlined_call_operand.hbm [shape: f32[2,4,128], index: 20, kind: output, shape index: {}]  }
   0x1   :  { %3593 = sst [smem:[#allocation11_spill]] %s3563_s0 }
   0x2   :  { %3594 = sst [smem:[#allocation12_spill]] %s3564_s1 }
   0x3   :  { %3595 = sst [smem:[#allocation13_spill]] %s3565_s2 }
   0x4   :  { %3596 = sst [smem:[#allocation14_spill]] %s3566_s3 }
   0x5   :  { %3597 = sst [smem:[#allocation15_spill]] %s3567_s4 }
   0x6   :  { %3598 = sst [smem:[#allocation16_spill]] %s3568_s5 }
   0x7   :  { %25 = vsyncpa [#allocation3], 0 }
   0x8   :  { %27 = vsyncpa [#allocation3 + $0x1], 0  ;;  %s3094_s1 = smov 0   ;;  %s3096_s22 = smov 0  }
   0x9   :  { %s3098_s23 = smov 0   ;;  %s3100_s24 = smov 0  }
   0xa LB: > { %3599 = sst [smem:[#allocation5_spill]] %s2970_s1  ;;  %s3115_s2 = sadd.s32 4294967295, %s2982_s24   ;;  %s2982_s24 = sphi %s3100_s24, %s3616_s24   ;;  %s2978_s23 = sphi %s3098_s23, %s3618_s23   ;;  %s2974_s22 = sphi %s3096_s22, %s3620_s22   ;;  %s2970_s1 = sphi %s3094_s1, %s3619_s1  }
   0xb   : > { %3600 = sst [smem:[#allocation6_spill]] %s2978_s23  ;;  %s2392_s25 = sadd.s32 4294967294, %s2982_s24  }
   0xc   : > { %3601 = sst [smem:[#allocation7_spill]] %s2982_s24  ;;  %s3119_s3 = sadd.s32 1, %s2982_s24  }
   0xd   : > { %3602 = sst [smem:[#allocation8_spill]] %s3119_s3  ;;  %s470_s26 = sadd.s32 1, %s2978_s23 }
   0xe   : > { %s467_s27 = ssub.s32 %s2982_s24, %s3119_s3  ;;  %p480_p0 = scmp.ne.s32.totalorder %s2978_s23, %s2974_s22 }
   0xf   : > { %p468_p1 = scmp.eq.s32.totalorder %s467_s27, 0  ;;  %p481_p2 = scmp.eq.s32.totalorder %s3115_s2, 1 }
  0x10   : > { %p486_p3 = scmp.ne.s32.totalorder %s2974_s22, %s2970_s1  ;;  %p487_p4 = scmp.eq.s32.totalorder %s2392_s25, 1 }
  0x11   : > { %s3130_s28 = scalar_select %p468_p1, %s2978_s23, %s470_s26  }
  0x12   : > { %p3132_p5 = por %p481_p2, %p480_p0  ;;  %p3136_p6 = por %p487_p4, %p486_p3 }
  0x13   : > { %3603 = sst [smem:[#allocation9_spill]] %s3130_s28  ;;  %p2395_p7 = scmp.ge.s32.totalorder %s2982_s24, 1 }
  0x14   : > { %s3605_s29 = scalar_select %p3136_p6, 1, 0 }
  0x15   : > { %p573_p8 = scmp.lt.s32.totalorder %s2982_s24, 3 }
  0x16   : > { %3606 = sst [smem:[#allocation10_spill]] %s3605_s29 }
  0x17   : > { %p574_p9 = pnand %p2395_p7, %p573_p8 }
  0x18   : > { %s3607_s21 = sld [smem:[#allocation13_spill]] (!%p574_p9)  ;;  %v2984_v1 = vmov (!%p574_p9), 0.0   ;;  %vm2985_vm0 = vmmov (!%p574_p9), 0   ;;  %p634_p10 = scmp.lt.s32.totalorder (!%p574_p9), %s3115_s2, 1  ;;  %vm789_vm1 = vcmask (!%p574_p9), 257024   ;;  %v2850_v17 = vld [vmem:[%s3571_s8] sm:$0xff] (!%p574_p9)  }
  0x19   : > { %577 = sbr.rel (%p574_p9) target bundleno = 6222 (0x184e), region = 100  ;;  %2603 = vmatprep.subr.bf16.mxu0 (!%p574_p9), %v2984_v1  ;;  %2623 = vmatprep.subr.bf16.mxu1 (!%p574_p9), %v2984_v1  ;;  %s3608_s23 = sld [smem:[#allocation12_spill]] (!%p574_p9)  ;;  %v2851_v18 = vld [vmem:[%s3571_s8 + $0x8] sm:$0xff] (!%p574_p9)   ;;  %vm758_vm2 = vcmask (!%p574_p9), 261120   ;;  %v2410_v30 = vld [vmem:[%s3569_s6] ss:$0 sm:$0xff] (!%p574_p9) }
  0x1a   : > { %2619 = vmatprep.mubr.msk.bf16.mxu0 (!%p574_p9), %vm2985_vm0, %v2984_v1  ;;  %2627 = vmatprep.mubr.msk.bf16.mxu1 (!%p574_p9), %vm2985_vm0, %v2984_v1  ;;  %s3609_s30 = sld [smem:[#allocation11_spill]] (!%p574_p9)  ;;  %s3610_s0 = sld [smem:[#allocation14_spill]] (!%p574_p9)  ;;  %v2411_v32 = vld [vmem:[%s3570_s7] ss:$0 sm:$0xff] (!%p574_p9)  ;;  %v2853_v42 = vld [vmem:[%s3572_s9 + $0x8] sm:$0xff] (!%p574_p9)   ;;  %vm998_vm3 = vcmask (!%p574_p9), 130048  }
  0x1b   : > { %2624 = vmatpush3.bf16.msra.mxu1 (!%p574_p9), %v2850_v17  ;;  %v2852_v41 = vld [vmem:[%s3572_s9] sm:$0xff] (!%p574_p9)   ;;  %s3612_s5 = sld [smem:[#allocation16_spill]] (!%p574_p9)  ;;  %v2855_v58 = vld [vmem:[%s3573_s10 + $0x8] sm:$0xff] (!%p574_p9)   ;;  %vm1062_vm4 = vcmask (!%p574_p9), 1045504   ;;  %vm1045_vm5 = vcmask (!%p574_p9), 93184   ;;  %vm1058_vm6 = vcmask (!%p574_p9), 97280  }
  0x1c   : > { %2625 = vmatprep.subr.bf16.mxu1 (!%p574_p9), %v2984_v1  ;;  %v2854_v56 = vld [vmem:[%s3573_s10] sm:$0xff] (!%p574_p9)   ;;  %s2987_s26 = smov (!%p574_p9), 16   ;;  %vm2275_vm7 = vcmask (!%p574_p9), 1043456  }
  0x1e   : > { %v2842_v0 = vld [vmem:[%s3607_s21] sm:$0xff] (!%p574_p9)   ;;  %v2843_v2 = vld [vmem:[%s3607_s21 + $0x8] sm:$0xff] (!%p574_p9)   ;;  %v2844_v3 = vld [vmem:[%s3607_s21 + $0x10] sm:$0xff] (!%p574_p9)  }
  0x1f   : > { %2604 = vmatpush3.bf16.msra.mxu0 (!%p574_p9), %v2842_v0  ;;  %v2845_v5 = vld [vmem:[%s3607_s21 + $0x18] sm:$0xff] (!%p574_p9)   ;;  %v2846_v7 = vld [vmem:[%s3607_s21 + $0x20] sm:$0xff] (!%p574_p9)   ;;  %v2847_v8 = vld [vmem:[%s3607_s21 + $0x28] sm:$0xff] (!%p574_p9)   ;;  %2626 = vmatpush3.bf16.msra.mxu1 (!%p574_p9), %v2851_v18 }
  0x20   : > { %2605 = vmatprep.subr.bf16.mxu0 %v2984_v1  ;;  %s635_s27 = scalar_select %p634_p10, %s3115_s2, 1  ;;  %v2848_v9 = vld [vmem:[%s3607_s21 + $0x30] sm:$0xff]   ;;  %v2849_v10 = vld [vmem:[%s3607_s21 + $0x38] sm:$0xff]   ;;  %2631 = vmatprep.subr.bf16.mxu1 %v2984_v1  ;;  %v2399_v19 = vld [vmem:[%s3610_s0] ss:$0 sm:$0xff] }
  0x21   : > { %s3611_s0 = sld [smem:[#allocation15_spill]]  ;;  %v2409_v53 = vld [vmem:[%s3612_s5] ss:$0 sm:$0xff] }
  0x22   : > { %s2397_s28 = sshll.u32 %s635_s27, 2 }
  0x23   : > { %2606 = vmatpush3.bf16.msra.mxu0 %v2843_v2  ;;  %s641_s3 = scalar_lea.vmem %s3608_s23, %s2397_s28  ;;  %s637_s24 = scalar_lea.vmem %s3609_s30, %s2397_s28 }
  0x24   : > { %2607 = vmatprep.subr.bf16.mxu0 %v2984_v1  ;;  %v3164_v4 = vld [vmem:[%s641_s3] sm:$0xf] }
  0x25   : > { %v790_v6 = vsel %vm789_vm1, %v3164_v4, 0.0  ;;  %v643_v11 = vld [vmem:[%s637_s24] sm:$0xf]  ;;  %s2986_s24 = smov 112  }
  0x26   : > { %791 = vadd.xlane.f32.xlu0 %v790_v6 }
  0x27   : > { %2608 = vmatpush3.bf16.msra.mxu0 %v2844_v3  ;;  %v2408_v51 = vld [vmem:[%s3611_s0] ss:$0 sm:$0xff] }
  0x28   : > { %2609 = vmatprep.subr.bf16.mxu0 %v2984_v1 }
  0x2b   : > { %2610 = vmatpush3.bf16.msra.mxu0 %v2845_v5 }
  0x2c   : > { %2611 = vmatprep.subr.bf16.mxu0 %v2984_v1 }
  0x2f   : > { %2612 = vmatpush3.bf16.msra.mxu0 %v2846_v7 }
  0x30   : > { %2613 = vmatprep.subr.bf16.mxu0 %v2984_v1 }
  0x33   : > { %2614 = vmatpush3.bf16.msra.mxu0 %v2847_v8 }
  0x34   : > { %2615 = vmatprep.subr.bf16.mxu0 %v2984_v1 }
  0x37   : > { %2616 = vmatpush3.bf16.msra.mxu0 %v2848_v9 }
  0x38   : > { %2617 = vmatprep.subr.bf16.mxu0 %v2984_v1 }
  0x3b   : > { %2618 = vmatpush3.bf16.msra.mxu0 %v2849_v10 }
  0x3c   : > { %2665 = vmatprep.subr.bf16.mxu0 %v2984_v1 }
  0x3e   : > { %2620 = vmatmul.mubr.bf16.vlgmr.msra.gmra.mrb[0].mxu0 %v643_v11 }
  0x3f   : > { %2667 = vmatprep.mubr.msk.bf16.mxu0 %vm2985_vm0, %v2984_v1 }
  0xb3   : > { %v792_v12 = vpop.xlane.xlu0 %791 }
  0xb4   : > { %v793_v13 = vmul.f32 0.03125, %v792_v12 }
  0xb6   : > { %v794_v14 = vsub.f32 %v3164_v4, %v793_v13 }
  0xb8   : > { %v795_v15 = vmul.f32 %v794_v14, %v794_v14 }
  0xba   : > { %v796_v16 = vsel %vm789_vm1, %v795_v15, 0.0 }
  0xbb   : > { %797 = vadd.xlane.f32.xlu1 %v796_v16 }
 0x111   : > { %v749_v20 = vpop.f32.mrb[0].mxu0 }
 0x112   : > { %v750_v21 = vadd.f32 %v2399_v19, %v749_v20  ;;  %v2621_v22 = vpop.f32.mrb[1].mxu0 }
 0x113   : > { %v752_v23 = vpop.f32.mrb[2].mxu0 }
 0x114   : > { %v2622_v24 = vpop.f32.mrb[3].mxu0  ;;  %v759_v25 = vsel %vm758_vm2, %v750_v21, 0.0 }
 0x115   : > { %760 = vadd.xlane.f32.xlu0 %v759_v25 }
 0x148   : > { %v798_v26 = vpop.xlane.xlu1 %797 }
 0x149   : > { %v799_v27 = vmul.f32 0.03125, %v798_v26 }
 0x14b   : > { %v800_v28 = vadd.f32 1e-05, %v799_v27 }
 0x14d   : > { %2888 = vrsqrt.f32 %v800_v28 }
 0x157   : > { %v2889_v29 = vpop.eup %2888 }
 0x158   : > { %v802_v31 = vmul.f32 %v2889_v29, %v794_v14 }
 0x15a   : > { %v809_v33 = vmul.f32 %v2410_v30, %v802_v31 }
 0x15c   : > { %v816_v34 = vadd.f32 %v2411_v32, %v809_v33 }
 0x15e   : > { %v817_v35 = vpack.c.bf16 %v816_v34, %v816_v34 }
 0x160   : > { %2628 = vmatmul.mubr.msk.bf16.vlgmr.msra.gmra.mrb[0].mxu1 %vm758_vm2, %v817_v35 }
 0x161   : > { %2635 = vmatprep.mubr.msk.bf16.mxu1 %vm2985_vm0, %v2984_v1  ;;  %2632 = vmatpush3.bf16.msra.mxu1 %v2852_v41 }
 0x162   : > { %2633 = vmatprep.subr.bf16.mxu1 %v2984_v1 }
 0x165   : > { %2634 = vmatpush3.bf16.msra.mxu1 %v2853_v42 }
 0x166   : > { %2639 = vmatprep.subr.bf16.mxu1 %v2984_v1 }
 0x1a2   : > { %v761_v36 = vpop.xlane.xlu0 %760 }
 0x1a3   : > { %v763_v37 = vmul.f32 0.03125, %v761_v36 }
 0x1a5   : > { %v764_v38 = vsub.f32 %v750_v21, %v763_v37 }
 0x1a7   : > { %v765_v39 = vmul.f32 %v764_v38, %v764_v38 }
 0x1a9   : > { %v766_v40 = vsel %vm758_vm2, %v765_v39, 0.0 }
 0x1aa   : > { %767 = vadd.xlane.f32.xlu1 %v766_v40 }
 0x233   : > { %v872_v43 = vpop.f32.mrb[0].mxu1 }
 0x234   : > { %v2629_v44 = vpop.f32.mrb[1].mxu1  ;;  %v995_v6 = vpack.c.bf16 %v872_v43, %v872_v43 }
 0x235   : > { %v875_v45 = vpop.f32.mrb[2].mxu1 }
 0x236   : > { %v2630_v47 = vpop.f32.mrb[3].mxu1 }
 0x237   : > { %v768_v46 = vpop.xlane.xlu1 %767  ;;  %v2856_v47 = vld [vmem:[%s3574_s11] sm:$0xff]  }
 0x238   : > { %v769_v48 = vmul.f32 0.03125, %v768_v46 }
 0x23a   : > { %v770_v49 = vadd.f32 1e-05, %v769_v48  ;;  %v2857_v48 = vld [vmem:[%s3574_s11 + $0x8] sm:$0xff]  }
 0x23c   : > { %2890 = vrsqrt.f32 %v770_v49 }
 0x246   : > { %v2891_v50 = vpop.eup %2890 }
 0x247   : > { %v3229_v52 = vmul.f32 %v2891_v50, %v764_v38 }
 0x249   : > { %v779_v54 = vmul.f32 %v2408_v51, %v3229_v52 }
 0x24b   : > { %v786_v55 = vadd.f32 %v2409_v53, %v779_v54 }
 0x24d   : > { %v818_v57 = vpack.c.bf16 %v816_v34, %v786_v55 }
 0x24f   : > { %2636 = vmatmul.mubr.msk.bf16.vlgmr.msra.gmra.mrb[4].mxu1 %vm758_vm2, %v818_v57 }
 0x250   : > { %2640 = vmatpush3.bf16.msra.mxu1 %v2854_v56  ;;  %2643 = vmatprep.mubr.msk.bf16.mxu1 %vm2985_vm0, %v2984_v1 }
 0x251   : > { %2641 = vmatprep.subr.bf16.mxu1 %v2984_v1 }
 0x254   : > { %2642 = vmatpush3.bf16.msra.mxu1 %v2855_v58 }
 0x255   : > { %2647 = vmatprep.subr.bf16.mxu1 %v2984_v1 }
 0x257   : > { %2644 = vmatmul.mubr.msk.bf16.vlgmr.msra.gmra.mrb[8].mxu1 %vm758_vm2, %v818_v57 }
 0x258   : > { %2649 = vmatprep.mubr.msk.bf16.mxu1 %vm2985_vm0, %v2984_v1 }
 0x322   : > { %v931_v59 = vpop.f32.mrb[4].mxu1 }
 0x323   : > { %v2637_v60 = vpop.f32.mrb[5].mxu1 }
 0x324   : > { %v934_v61 = vpop.f32.mrb[6].mxu1 }
 0x325   : > { %v996_v62 = vpack.c.bf16 %v934_v61, %v931_v59  ;;  %v2638_v63 = vpop.f32.mrb[7].mxu1 }
 0x327   : > { %v1003_v0 = vsel %vm998_vm3, %v996_v62, 0 }
 0x328   : > { %2648 = vmatpush3.bf16.xpose.msra.mxu1 %v1003_v0 }
 0x329   : > { %2653 = vmatprep.subr.bf16.mxu1 %v2984_v1 }
 0x32a   : > { %v988_v2 = vpop.f32.mrb[8].mxu1 }
 0x32b   : > { %v2645_v3 = vpop.f32.mrb[9].mxu1 }
 0x32c   : > { %v991_v5 = vpop.f32.mrb[10].mxu1 }
 0x32d   : > { %v997_v7 = vpack.c.bf16 %v991_v5, %v988_v2  ;;  %v2646_v8 = vpop.f32.mrb[11].mxu1 }
 0x32e   : > { %v2861_v8 = vld [vmem:[%s3578_s15 + $0x8] sm:$0xff]  }
 0x32f   : > { %v1064_v9 = vsel %vm1062_vm4, %v997_v7, 0  ;;  %2650 = vmatmul.mubr.msk.bf16.vlgmr.msra.gmra.mrb[12].mxu1 %vm998_vm3, %v995_v6 }
 0x330   : > { %2654 = vmatpush3.bf16.msra.mxu1 %v1064_v9  ;;  %2655 = vmatprep.mubr.msk.bf16.mxu1 %vm2985_vm0, %v2984_v1  ;;  %v2862_v9 = vld [vmem:[%s3578_s15 + $0x10] sm:$0xff]  }
 0x331   : > { %2659 = vmatprep.subr.bf16.mxu1 %v2984_v1 }
 0x402   : > { %v1039_v10 = vpop.f32.mrb[12].mxu1 }
 0x403   : > { %v2651_v11 = vpop.f32.mrb[13].mxu1  ;;  %v1046_v12 = vsel %vm1045_vm5, %v1039_v10, -inf }
 0x404   : > { %1047 = vmax.xlane.f32.xlu0 %v1046_v12  ;;  %v1042_v13 = vpop.f32.mrb[14].mxu1 }
 0x405   : > { %v2652_v14 = vpop.f32.mrb[15].mxu1 }
 0x406   : > { %v2428_v14 = vld [vmem:[%s3575_s12] ss:$0 sm:$0xff] }
 0x41a   : > { %1110 = vrot.lane.b32.xlu0 %v996_v62, %s2986_s24 }
 0x491   : > { %v1048_v15 = vpop.xlane.xlu0 %1047 }
 0x492   : > { %v1049_v16 = vsub.f32 %v1039_v10, %v1048_v15 }
 0x494   : > { %v1050_v17 = vmul.f32 1.442695, %v1049_v16  ;;  %v2429_v16 = vld [vmem:[%s3576_s13] ss:$0 sm:$0xff] }
 0x495   : > { %v1111_v23 = vpop.permute.xlu0 %1110 }
 0x496   : > { %2892 = vpow2.f32 %v1050_v17  ;;  %v1116_v25 = vsel %vm998_vm3, %v1111_v23, 0  ;;  %v2866_v23 = vld [vmem:[%s3578_s15 + $0x30] sm:$0xff]  }
 0x4a0   : > { %v2893_v18 = vpop.eup %2892 }
 0x4a1   : > { %v1052_v19 = vsel %vm1045_vm5, %v2893_v18, 0.0 }
 0x4a2   : > { %1053 = vadd.xlane.f32.xlu1 %v1052_v19 }
 0x4b3   : > { %1107 = vrot.lane.b32.xlu1 %v995_v6, %s2986_s24  ;;  %v2859_v6 = vld [vmem:[%s3577_s14 + $0x8] sm:$0xff]  }
 0x52f   : > { %v1054_v20 = vpop.xlane.xlu1 %1053 }
 0x530   : > { %2894 = vrcp.f32 %v1054_v20  ;;  %v2863_v20 = vld [vmem:[%s3578_s15 + $0x18] sm:$0xff]  }
 0x533   : > { %v1108_v26 = vpop.permute.xlu1 %1107 }
 0x53a   : > { %v2895_v21 = vpop.eup %2894 }
 0x53b   : > { %v1056_v22 = vmul.f32 %v2895_v21, %v2893_v18  ;;  %v2864_v21 = vld [vmem:[%s3578_s15 + $0x20] sm:$0xff]  }
 0x53d   : > { %v1057_v24 = vpack.c.bf16 %v1056_v22, %v1056_v22  ;;  %v2865_v22 = vld [vmem:[%s3578_s15 + $0x28] sm:$0xff]  }
 0x53f   : > { %2656 = vmatmul.mubr.msk.bf16.vlgmr.msra.gmra.mrb[16].mxu1 %vm1058_vm6, %v1057_v24  ;;  %v2867_v24 = vld [vmem:[%s3578_s15 + $0x38] sm:$0xff]  }
 0x540   : > { %2660 = vmatpush3.bf16.xpose.msra.mxu1 %v1116_v25  ;;  %2661 = vmatprep.mubr.msk.bf16.mxu1 %vm2985_vm0, %v2984_v1 }
 0x541   : > { %2671 = vmatprep.subr.bf16.mxu1 %v2984_v1 }
 0x547   : > { %2662 = vmatmul.mubr.msk.bf16.vlgmr.msra.gmra.mrb[20].mxu1 %vm998_vm3, %v1108_v26 }
 0x548   : > { %2675 = vmatprep.mubr.msk.bf16.mxu1 %vm2985_vm0, %v2984_v1  ;;  %2672 = vmatpush3.bf16.msra.mxu1 %v2856_v47  ;;  %v2869_v47 = vld [vmem:[%s3571_s8 + $0x18] sm:$0xff]  }
 0x549   : > { %2673 = vmatprep.subr.bf16.mxu1 %v2984_v1 }
 0x54c   : > { %2674 = vmatpush3.bf16.msra.mxu1 %v2857_v48 }
 0x54d   : > { %2687 = vmatprep.subr.bf16.mxu1 %v2984_v1 }
 0x612   : > { %v1100_v27 = vpop.f32.mrb[16].mxu1 }
 0x613   : > { %v2657_v28 = vpop.f32.mrb[17].mxu1 }
 0x614   : > { %v1103_v29 = vpop.f32.mrb[18].mxu1 }
 0x615   : > { %v2658_v30 = vpop.f32.mrb[19].mxu1 }
 0x61a   : > { %v1152_v31 = vpop.f32.mrb[20].mxu1 }
 0x61b   : > { %v2663_v32 = vpop.f32.mrb[21].mxu1  ;;  %v1158_v33 = vsel %vm1045_vm5, %v1152_v31, -inf }
 0x61c   : > { %1159 = vmax.xlane.f32.xlu1 %v1158_v33  ;;  %v1155_v34 = vpop.f32.mrb[22].mxu1 }
 0x61d   : > { %v2664_v35 = vpop.f32.mrb[23].mxu1 }
 0x6a9   : > { %v1160_v36 = vpop.xlane.xlu1 %1159 }
 0x6aa   : > { %v1161_v37 = vsub.f32 %v1152_v31, %v1160_v36 }
 0x6ac   : > { %v1162_v38 = vmul.f32 1.442695, %v1161_v37 }
 0x6ae   : > { %2896 = vpow2.f32 %v1162_v38 }
 0x6b8   : > { %v2897_v39 = vpop.eup %2896 }
 0x6b9   : > { %v1164_v40 = vsel %vm1045_vm5, %v2897_v39, 0.0 }
 0x6ba   : > { %1165 = vadd.xlane.f32.xlu0 %v1164_v40 }
 0x6d0   : > { %1171 = vrot.lane.b32.xlu0 %v997_v7, %s2986_s24  ;;  %v2860_v7 = vld [vmem:[%s3578_s15] sm:$0xff]  }
 0x747   : > { %v1166_v41 = vpop.xlane.xlu0 %1165 }
 0x748   : > { %2898 = vrcp.f32 %v1166_v41 }
 0x74b   : > { %v1172_v42 = vpop.permute.xlu0 %1171 }
 0x74c   : > { %v1177_v43 = vsel %vm1062_vm4, %v1172_v42, 0 }
 0x74d   : > { %2666 = vmatpush3.bf16.msra.mxu0 %v1177_v43 }
 0x74e   : > { %2679 = vmatprep.subr.bf16.mxu0 %v2984_v1 }
 0x752   : > { %v2899_v44 = vpop.eup %2898 }
 0x753   : > { %v1168_v45 = vmul.f32 %v2899_v44, %v2897_v39 }
 0x755   : > { %v1169_v46 = vpack.c.bf16 %v1168_v45, %v1168_v45 }
 0x757   : > { %2668 = vmatmul.mubr.msk.bf16.vlgmr.msra.gmra.mrb[4].mxu0 %vm1058_vm6, %v1169_v46  ;;  %v2868_v46 = vld [vmem:[%s3571_s8 + $0x10] sm:$0xff]  }
 0x758   : > { %2683 = vmatprep.mubr.msk.bf16.mxu0 %vm2985_vm0, %v2984_v1 }
 0x82a   : > { %v1213_v49 = vpop.f32.mrb[4].mxu0 }
 0x82b   : > { %1220 = vrot.lane.b32.xlu1 %v1213_v49, %s2987_s26  ;;  %v2669_v50 = vpop.f32.mrb[5].mxu0 }
 0x82c   : > { %v1216_v51 = vpop.f32.mrb[6].mxu0 }
 0x82d   : > { %v2670_v53 = vpop.f32.mrb[7].mxu0 }
 0x82e   : > { %v2447_v53 = vld [vmem:[%s3569_s6 + $0x1] ss:$0 sm:$0xff] }
 0x89d   : > { %v1221_v54 = vpop.permute.xlu1 %1220 }
 0x89e   : > { %v1223_v55 = vsel %vm998_vm3, %v1100_v27, %v1221_v54 }
 0x89f   : > { %v1224_v56 = vpack.c.bf16 %v1223_v55, %v1223_v55  ;;  %v2448_v55 = vld [vmem:[%s3570_s7 + $0x1] ss:$0 sm:$0xff] }
 0x8a1   : > { %2676 = vmatmul.mubr.msk.bf16.vlgmr.msra.gmra.mrb[24].mxu1 %vm758_vm2, %v1224_v56 }
 0x8a2   : > { %2703 = vmatprep.mubr.msk.bf16.mxu1 %vm2985_vm0, %v2984_v1  ;;  %2688 = vmatpush3.bf16.msra.mxu1 %v2860_v7 }
 0x8a3   : > { %2689 = vmatprep.subr.bf16.mxu1 %v2984_v1 }
 0x8a6   : > { %2690 = vmatpush3.bf16.msra.mxu1 %v2861_v8 }
 0x8a7   : > { %2691 = vmatprep.subr.bf16.mxu1 %v2984_v1 }
 0x8aa   : > { %2692 = vmatpush3.bf16.msra.mxu1 %v2862_v9 }
 0x8ab   : > { %2693 = vmatprep.subr.bf16.mxu1 %v2984_v1 }
 0x8ae   : > { %2694 = vmatpush3.bf16.msra.mxu1 %v2863_v20 }
 0x8af   : > { %2695 = vmatprep.subr.bf16.mxu1 %v2984_v1 }
 0x8b2   : > { %2696 = vmatpush3.bf16.msra.mxu1 %v2864_v21 }
 0x8b3   : > { %2697 = vmatprep.subr.bf16.mxu1 %v2984_v1 }
 0x8b6   : > { %2698 = vmatpush3.bf16.msra.mxu1 %v2865_v22 }
 0x8b7   : > { %2699 = vmatprep.subr.bf16.mxu1 %v2984_v1 }
 0x8ba   : > { %2700 = vmatpush3.bf16.msra.mxu1 %v2866_v23 }
 0x8bb   : > { %2701 = vmatprep.subr.bf16.mxu1 %v2984_v1 }
 0x8be   : > { %2702 = vmatpush3.bf16.msra.mxu1 %v2867_v24 }
 0x8bf   : > { %2737 = vmatprep.subr.bf16.mxu1 %v2984_v1 }
 0x974   : > { %v1278_v57 = vpop.f32.mrb[24].mxu1 }
 0x975   : > { %v3290_v58 = vadd.f32 %v1278_v57, %v3164_v4  ;;  %v2677_v59 = vpop.f32.mrb[25].mxu1  ;;  %v2858_v4 = vld [vmem:[%s3577_s14] sm:$0xff]  }
 0x976   : > { %v1281_v60 = vpop.f32.mrb[26].mxu1  ;;  %2680 = vmatpush3.bf16.msra.mxu0 %v2858_v4  ;;  %v2870_v59 = vld [vmem:[%s3572_s9 + $0x10] sm:$0xff]  }
 0x977   : > { %v2678_v61 = vpop.f32.mrb[27].mxu1  ;;  %v1286_v62 = vsel %vm789_vm1, %v3290_v58, 0.0  ;;  %2681 = vmatprep.subr.bf16.mxu0 %v2984_v1 }
 0x978   : > { %1287 = vadd.xlane.f32.xlu1 %v1286_v62  ;;  %v2871_v62 = vld [vmem:[%s3572_s9 + $0x18] sm:$0xff]  }
 0x97a   : > { %2682 = vmatpush3.bf16.msra.mxu0 %v2859_v6 }
 0x97b   : > { %2707 = vmatprep.subr.bf16.mxu0 %v2984_v1 }
 0xa05   : > { %v1288_v63 = vpop.xlane.xlu1 %1287 }
 0xa06   : > { %v1289_v0 = vmul.f32 0.03125, %v1288_v63  ;;  %v2444_v63 = vld [vmem:[%s3612_s5 + $0x1] ss:$0 sm:$0xff] }
 0xa08   : > { %v1290_v2 = vsub.f32 %v3290_v58, %v1289_v0 }
 0xa0a   : > { %v1291_v3 = vmul.f32 %v1290_v2, %v1290_v2 }
 0xa0c   : > { %v1292_v5 = vsel %vm789_vm1, %v1291_v3, 0.0  ;;  %v2873_v3 = vld [vmem:[%s3573_s10 + $0x18] sm:$0xff]  }
 0xa0d   : > { %1293 = vadd.xlane.f32.xlu0 %v1292_v5 }
 0xa9a   : > { %v1294_v10 = vpop.xlane.xlu0 %1293 }
 0xa9b   : > { %v1295_v11 = vmul.f32 0.03125, %v1294_v10 }
 0xa9d   : > { %v1296_v12 = vadd.f32 1e-05, %v1295_v11 }
 0xa9f   : > { %2900 = vrsqrt.f32 %v1296_v12 }
 0xaa9   : > { %v2901_v13 = vpop.eup %2900 }
 0xaaa   : > { %v1298_v15 = vmul.f32 %v2901_v13, %v1290_v2 }
 0xaac   : > { %v1305_v17 = vmul.f32 %v2428_v14, %v1298_v15 }
 0xaae   : > { %v1312_v18 = vadd.f32 %v2429_v16, %v1305_v17 }
 0xab0   : > { %v1313_v19 = vpack.c.bf16 %v1312_v18, %v1312_v18 }
 0xab2   : > { %2684 = vmatmul.mubr.msk.bf16.vlgmr.msra.gmra.mrb[8].mxu0 %vm758_vm2, %v1313_v19 }
 0xab3   : > { %2711 = vmatprep.mubr.msk.bf16.mxu0 %vm2985_vm0, %v2984_v1  ;;  %2708 = vmatpush3.bf16.msra.mxu0 %v2868_v46 }
 0xab4   : > { %2709 = vmatprep.subr.bf16.mxu0 %v2984_v1 }
 0xab7   : > { %2710 = vmatpush3.bf16.msra.mxu0 %v2869_v47 }
 0xab8   : > { %2715 = vmatprep.subr.bf16.mxu0 %v2984_v1 }
 0xb85   : > { %v1367_v25 = vpop.f32.mrb[8].mxu0 }
 0xb86   : > { %v1375_v26 = vmul.f32 0.70710677, %v1367_v25  ;;  %v2685_v27 = vpop.f32.mrb[9].mxu0  ;;  %v1373_v31 = vmul.f32 0.5, %v1367_v25 }
 0xb87   : > { %v1370_v28 = vpop.f32.mrb[10].mxu0 }
 0xb88   : > { %2902 = verf.f32 %v1375_v26  ;;  %v2686_v29 = vpop.f32.mrb[11].mxu0 }
 0xb92   : > { %v2903_v30 = vpop.eup %2902 }
 0xb93   : > { %v1377_v32 = vadd.f32 1.0, %v2903_v30 }
 0xb95   : > { %v1378_v33 = vmul.f32 %v1377_v32, %v1373_v31 }
 0xb97   : > { %v1379_v34 = vpack.c.bf16 %v1378_v33, %v1378_v33 }
 0xb99   : > { %2704 = vmatmul.mubr.bf16.vlgmr.msra.gmra.mrb[28].mxu1 %v1379_v34 }
 0xb9a   : > { %2739 = vmatprep.mubr.msk.bf16.mxu1 %vm2985_vm0, %v2984_v1 }
 0xc6c   : > { %v1478_v35 = vpop.f32.mrb[28].mxu1 }
 0xc6d   : > { %v3348_v36 = vadd.f32 %v1478_v35, %v3290_v58  ;;  %v2705_v37 = vpop.f32.mrb[29].mxu1  ;;  %v2443_v58 = vld [vmem:[%s3611_s0 + $0x1] ss:$0 sm:$0xff] }
 0xc6e   : > { %v1481_v38 = vpop.f32.mrb[30].mxu1  ;;  %v1494_v61 = vmul.f32 %v2443_v58, %v3229_v52  ;;  %v2872_v52 = vld [vmem:[%s3573_s10 + $0x10] sm:$0xff]  }
 0xc6f   : > { %v2706_v39 = vpop.f32.mrb[31].mxu1  ;;  %v1506_v40 = vsel %vm789_vm1, %v3348_v36, 0.0 }
 0xc70   : > { %1507 = vadd.xlane.f32.xlu0 %v1506_v40  ;;  %v1501_v0 = vadd.f32 %v2444_v63, %v1494_v61  ;;  %v2875_v61 = vld [vmem:[%s3574_s11 + $0x18] sm:$0xff]  }
 0xcfd   : > { %v1508_v41 = vpop.xlane.xlu0 %1507 }
 0xcfe   : > { %v1509_v42 = vmul.f32 0.03125, %v1508_v41 }
 0xd00   : > { %v1510_v43 = vsub.f32 %v3348_v36, %v1509_v42 }
 0xd02   : > { %v1511_v44 = vmul.f32 %v1510_v43, %v1510_v43 }
 0xd04   : > { %v1512_v45 = vsel %vm789_vm1, %v1511_v44, 0.0 }
 0xd05   : > { %1513 = vadd.xlane.f32.xlu1 %v1512_v45 }
 0xd92   : > { %v1514_v48 = vpop.xlane.xlu1 %1513 }
 0xd93   : > { %v1515_v49 = vmul.f32 0.03125, %v1514_v48 }
 0xd95   : > { %v1516_v50 = vadd.f32 1e-05, %v1515_v49 }
 0xd97   : > { %2904 = vrsqrt.f32 %v1516_v50 }
 0xda1   : > { %v2905_v51 = vpop.eup %2904 }
 0xda2   : > { %v1518_v54 = vmul.f32 %v2905_v51, %v1510_v43 }
 0xda4   : > { %v1525_v56 = vmul.f32 %v2447_v53, %v1518_v54 }
 0xda6   : > { %v1532_v57 = vadd.f32 %v2448_v55, %v1525_v56  ;;  %v2874_v56 = vld [vmem:[%s3574_s11 + $0x10] sm:$0xff]  }
 0xda8   : > { %v1533_v60 = vpack.c.bf16 %v1532_v57, %v1532_v57  ;;  %v1534_v2 = vpack.c.bf16 %v1532_v57, %v1501_v0 }
 0xdaa   : > { %2712 = vmatmul.mubr.msk.bf16.vlgmr.msra.gmra.mrb[12].mxu0 %vm758_vm2, %v1533_v60 }
 0xdab   : > { %2716 = vmatpush3.bf16.msra.mxu0 %v2870_v59  ;;  %2719 = vmatprep.mubr.msk.bf16.mxu0 %vm2985_vm0, %v2984_v1 }
 0xdac   : > { %2717 = vmatprep.subr.bf16.mxu0 %v2984_v1 }
 0xdaf   : > { %2718 = vmatpush3.bf16.msra.mxu0 %v2871_v62 }
 0xdb0   : > { %2723 = vmatprep.subr.bf16.mxu0 %v2984_v1 }
 0xdb2   : > { %2720 = vmatmul.mubr.msk.bf16.vlgmr.msra.gmra.mrb[16].mxu0 %vm758_vm2, %v1534_v2 }
 0xdb3   : > { %2724 = vmatpush3.bf16.msra.mxu0 %v2872_v52  ;;  %2727 = vmatprep.mubr.msk.bf16.mxu0 %vm2985_vm0, %v2984_v1 }
 0xdb4   : > { %2725 = vmatprep.subr.bf16.mxu0 %v2984_v1 }
 0xdb7   : > { %2726 = vmatpush3.bf16.msra.mxu0 %v2873_v3 }
 0xdb8   : > { %2731 = vmatprep.subr.bf16.mxu0 %v2984_v1 }
 0xdba   : > { %2728 = vmatmul.mubr.msk.bf16.vlgmr.msra.gmra.mrb[20].mxu0 %vm758_vm2, %v1534_v2 }
 0xdbb   : > { %2733 = vmatprep.mubr.msk.bf16.mxu0 %vm2985_vm0, %v2984_v1 }
 0xe7d   : > { %v1589_v5 = vpop.f32.mrb[12].mxu0 }
 0xe7e   : > { %v1714_v4 = vpack.c.bf16 %v1589_v5, %v1589_v5  ;;  %v2713_v6 = vpop.f32.mrb[13].mxu0 }
 0xe7f   : > { %v1592_v7 = vpop.f32.mrb[14].mxu0 }
 0xe80   : > { %1822 = vrot.lane.b32.xlu1 %v1714_v4, %s2986_s24  ;;  %v2714_v8 = vpop.f32.mrb[15].mxu0 }
 0xe85   : > { %v1649_v9 = vpop.f32.mrb[16].mxu0 }
 0xe86   : > { %v2721_v10 = vpop.f32.mrb[17].mxu0 }
 0xe87   : > { %v1652_v11 = vpop.f32.mrb[18].mxu0 }
 0xe88   : > { %v1715_v12 = vpack.c.bf16 %v1652_v11, %v1649_v9  ;;  %v2722_v13 = vpop.f32.mrb[19].mxu0 }
 0xe8a   : > { %v1721_v14 = vsel %vm998_vm3, %v1715_v12, 0  ;;  %1825 = vrot.lane.b32.xlu0 %v1715_v12, %s2986_s24 }
 0xe8b   : > { %2732 = vmatpush3.bf16.xpose.msra.mxu0 %v1721_v14 }
 0xe8c   : > { %2743 = vmatprep.subr.bf16.mxu0 %v2984_v1 }
 0xe8d   : > { %v1707_v15 = vpop.f32.mrb[20].mxu0 }
 0xe8e   : > { %v2729_v16 = vpop.f32.mrb[21].mxu0 }
 0xe8f   : > { %v1710_v17 = vpop.f32.mrb[22].mxu0  ;;  %v2877_v16 = vld [vmem:[%s3577_s14 + $0x18] sm:$0xff]  }
 0xe90   : > { %v1716_v18 = vpack.c.bf16 %v1710_v17, %v1707_v15  ;;  %v2730_v19 = vpop.f32.mrb[23].mxu0  ;;  %v2878_v17 = vld [vmem:[%s3578_s15 + $0x40] sm:$0xff]  }
 0xe91   : > { %v2880_v19 = vld [vmem:[%s3578_s15 + $0x50] sm:$0xff]  }
 0xe92   : > { %v1779_v20 = vsel %vm1062_vm4, %v1716_v18, 0  ;;  %2734 = vmatmul.mubr.msk.bf16.vlgmr.msra.gmra.mrb[24].mxu0 %vm998_vm3, %v1714_v4 }
 0xe93   : > { %2738 = vmatpush3.bf16.msra.mxu1 %v1779_v20  ;;  %2745 = vmatprep.mubr.msk.bf16.mxu0 %vm2985_vm0, %v2984_v1 }
 0xe94   : > { %2749 = vmatprep.subr.bf16.mxu1 %v2984_v1 }
 0xef2   : > { %v1823_v23 = vpop.permute.xlu1 %1822 }
 0xefc   : > { %v1826_v21 = vpop.permute.xlu0 %1825 }
 0xefd   : > { %v1831_v22 = vsel %vm998_vm3, %v1826_v21, 0 }
 0xefe   : > { %2744 = vmatpush3.bf16.xpose.msra.mxu0 %v1831_v22 }
 0xeff   : > { %2755 = vmatprep.subr.bf16.mxu0 %v2984_v1 }
 0xf05   : > { %2746 = vmatmul.mubr.msk.bf16.vlgmr.msra.gmra.mrb[28].mxu0 %vm998_vm3, %v1823_v23 }
 0xf06   : > { %2759 = vmatprep.mubr.msk.bf16.mxu0 %vm2985_vm0, %v2984_v1  ;;  %2756 = vmatpush3.bf16.msra.mxu0 %v2874_v56 }
 0xf07   : > { %2757 = vmatprep.subr.bf16.mxu0 %v2984_v1 }
 0xf0a   : > { %2758 = vmatpush3.bf16.msra.mxu0 %v2875_v61 }
 0xf0b   : > { %2771 = vmatprep.subr.bf16.mxu0 %v2984_v1 }
 0xf65   : > { %v1757_v24 = vpop.f32.mrb[24].mxu0 }
 0xf66   : > { %v2735_v25 = vpop.f32.mrb[25].mxu0  ;;  %v1763_v26 = vsel %vm1045_vm5, %v1757_v24, -inf }
 0xf67   : > { %1764 = vmax.xlane.f32.xlu1 %v1763_v26  ;;  %v1760_v27 = vpop.f32.mrb[26].mxu0  ;;  %v2484_v26 = vld [vmem:[%s3576_s13 + $0x1] ss:$0 sm:$0xff] }
 0xf68   : > { %v2736_v28 = vpop.f32.mrb[27].mxu0 }
 0xfd8   : > { %v1867_v29 = vpop.f32.mrb[28].mxu0 }
 0xfd9   : > { %v2747_v30 = vpop.f32.mrb[29].mxu0  ;;  %v1873_v31 = vsel %vm1045_vm5, %v1867_v29, -inf }
 0xfda   : > { %1874 = vmax.xlane.f32.xlu0 %v1873_v31  ;;  %v1870_v32 = vpop.f32.mrb[30].mxu0  ;;  %v2881_v30 = vld [vmem:[%s3578_s15 + $0x58] sm:$0xff]   ;;  %v2882_v31 = vld [vmem:[%s3578_s15 + $0x60] sm:$0xff]  }
 0xfdb   : > { %v2748_v33 = vpop.f32.mrb[31].mxu0  ;;  %v2883_v32 = vld [vmem:[%s3578_s15 + $0x68] sm:$0xff]  }
 0xfdc   : > { %v2884_v33 = vld [vmem:[%s3578_s15 + $0x70] sm:$0xff]  }
 0xff4   : > { %v1765_v34 = vpop.xlane.xlu1 %1764 }
 0xff5   : > { %v1766_v35 = vsub.f32 %v1757_v24, %v1765_v34  ;;  %v2483_v24 = vld [vmem:[%s3575_s12 + $0x1] ss:$0 sm:$0xff]  ;;  %v2885_v34 = vld [vmem:[%s3578_s15 + $0x78] sm:$0xff]  }
 0xff7   : > { %v1767_v37 = vmul.f32 1.442695, %v1766_v35  ;;  %v2886_v35 = vld [vmem:[%s3579_s16] sm:$0xff]  }
 0xff9   : > { %2906 = vpow2.f32 %v1767_v37 }
0x1003   : > { %v2907_v38 = vpop.eup %2906 }
0x1004   : > { %v1769_v39 = vsel %vm1045_vm5, %v2907_v38, 0.0 }
0x1005   : > { %1770 = vadd.xlane.f32.xlu0 %v1769_v39 }
0x101b   : > { %1886 = vrot.lane.b32.xlu0 %v1716_v18, %s2986_s24  ;;  %v2879_v18 = vld [vmem:[%s3578_s15 + $0x48] sm:$0xff]   ;;  %s2524_s24 = sshll.u32 %s3115_s2, 6  ;;  %s2988_s2 = smov [#allocation2]  }
0x101c   : > { %s3521_s5 = scalar_lea.hbm %s3583_s20, %s2524_s24 }
0x1067   : > { %v1875_v40 = vpop.xlane.xlu0 %1874 }
0x1068   : > { %v1876_v41 = vsub.f32 %v1867_v29, %v1875_v40 }
0x106a   : > { %v1877_v42 = vmul.f32 1.442695, %v1876_v41 }
0x106c   : > { %2908 = vpow2.f32 %v1877_v42 }
0x1076   : > { %v2909_v43 = vpop.eup %2908 }
0x1077   : > { %v1879_v44 = vsel %vm1045_vm5, %v2909_v43, 0.0 }
0x1078   : > { %1880 = vadd.xlane.f32.xlu1 %v1879_v44 }
0x1092   : > { %v1771_v45 = vpop.xlane.xlu0 %1770 }
0x1093   : > { %2910 = vrcp.f32 %v1771_v45 }
0x1096   : > { %v1887_v48 = vpop.permute.xlu0 %1886 }
0x1097   : > { %v1892_v50 = vsel %vm1062_vm4, %v1887_v48, 0 }
0x109d   : > { %v2911_v46 = vpop.eup %2910 }
0x109e   : > { %v1773_v47 = vmul.f32 %v2911_v46, %v2907_v38 }
0x10a0   : > { %v1774_v49 = vpack.c.bf16 %v1773_v47, %v1773_v47  ;;  %v2887_v47 = vld [vmem:[%s3579_s16 + $0x8] sm:$0xff]  }
0x10a2   : > { %2740 = vmatmul.mubr.msk.bf16.vlgmr.msra.gmra.mrb[32].mxu1 %vm1058_vm6, %v1774_v49 }
0x10a3   : > { %2750 = vmatpush3.bf16.msra.mxu1 %v1892_v50  ;;  %2751 = vmatprep.mubr.msk.bf16.mxu1 %vm2985_vm0, %v2984_v1 }
0x10a4   : > { %2763 = vmatprep.subr.bf16.mxu1 %v2984_v1 }
0x1105   : > { %v1881_v51 = vpop.xlane.xlu1 %1880 }
0x1106   : > { %2912 = vrcp.f32 %v1881_v51 }
0x1110   : > { %v2913_v53 = vpop.eup %2912 }
0x1111   : > { %v1883_v54 = vmul.f32 %v2913_v53, %v2909_v43 }
0x1113   : > { %v1884_v55 = vpack.c.bf16 %v1883_v54, %v1883_v54 }
0x1115   : > { %2752 = vmatmul.mubr.msk.bf16.vlgmr.msra.gmra.mrb[36].mxu1 %vm1058_vm6, %v1884_v55  ;;  %v2516_v55 = vld [vmem:[%s3580_s17] ss:$0 sm:$0xff] }
0x1116   : > { %2767 = vmatprep.mubr.msk.bf16.mxu1 %vm2985_vm0, %v2984_v1 }
0x1175   : > { %v1815_v57 = vpop.f32.mrb[32].mxu1 }
0x1176   : > { %v2741_v58 = vpop.f32.mrb[33].mxu1 }
0x1177   : > { %v1818_v59 = vpop.f32.mrb[34].mxu1 }
0x1178   : > { %v2742_v60 = vpop.f32.mrb[35].mxu1 }
0x11e8   : > { %v1928_v62 = vpop.f32.mrb[36].mxu1 }
0x11e9   : > { %1935 = vrot.lane.b32.xlu1 %v1928_v62, %s2987_s26  ;;  %v2753_v63 = vpop.f32.mrb[37].mxu1  ;;  %v2270_v62 = vlaneseq  ;;  %s631_s26 = sand.u32 1, %s2974_s22  }
0x11ea   : > { %v1931_v0 = vpop.f32.mrb[38].mxu1  ;;  %s2396_s25 = sshll.u32 %s631_s26, 2  ;;  %s2308_s27 = scalar_lea.sflag [#allocation3], %s631_s26 }
0x11eb   : > { %v2754_v52 = vpop.f32.mrb[39].mxu1  ;;  %v2271_v63 = vand.u32 127, %v2270_v62  ;;  %s633_s3 = scalar_lea.vmem [#allocation2], %s2396_s25  ;;  %s2924_s25 = sshll.u32 %s2988_s2, 4  ;;  %s2925_s25 = int_to_ptr.vmem [resolvable:$false] %s2924_s25 }
0x11ec   : > { %s2321_s1 = sshll.u32 %s633_s3, 4  ;;  %s2926_s28 = scalar_lea.vmem %s2925_s25, 128  ;;  %s3523_s1 = int_to_ptr.vmem [resolvable:$true] %s2321_s1 }
0x11ed   : > { %vm2272_vm8 = vcmp.lt.s32.totalorder %v2271_v63, 32  ;;  %s2920_s30 = scalar_lea.vmem %s3523_s1, 64  ;;  %p2927_p0 = scmp.lt.s32.totalorder %s3523_s1, %s2925_s25 }
0x11ee   : > { %p2921_p11 = scmp.ne.s32.totalorder %s3523_s1, %s2920_s30  ;;  %p2928_p1 = scmp.lt.s32.totalorder %s2926_s28, %s2920_s30 }
0x11f0   : > { %p2922_p12 = pnand %p2921_p11, %p3132_p5  ;;  %p2929_p2 = por %p2928_p1, %p2927_p0 }
0x11f2   : > { %p2923_p13 = pneg %p2922_p12 }
0x11f4   : > { %p2930_p3 = pnand %p2929_p2, %p2923_p13 }
0x125b   : > { %v1936_v2 = vpop.permute.xlu1 %1935 }
0x125c   : > { %v1938_v3 = vsel %vm998_vm3, %v1815_v57, %v1936_v2  ;;  %v2520_v2 = vsel %vm2272_vm8, 1.0, %v2984_v1 }
0x125d   : > { %v1939_v5 = vpack.c.bf16 %v1938_v3, %v1938_v3 }
0x125f   : > { %2760 = vmatmul.mubr.msk.bf16.vlgmr.msra.gmra.mrb[32].mxu0 %vm758_vm2, %v1939_v5 }
0x1260   : > { %2787 = vmatprep.mubr.msk.bf16.mxu0 %vm2985_vm0, %v2984_v1  ;;  %2772 = vmatpush3.bf16.msra.mxu0 %v2878_v17 }
0x1261   : > { %2773 = vmatprep.subr.bf16.mxu0 %v2984_v1 }
0x1264   : > { %2774 = vmatpush3.bf16.msra.mxu0 %v2879_v18 }
0x1265   : > { %2775 = vmatprep.subr.bf16.mxu0 %v2984_v1 }
0x1268   : > { %2776 = vmatpush3.bf16.msra.mxu0 %v2880_v19 }
0x1269   : > { %2777 = vmatprep.subr.bf16.mxu0 %v2984_v1 }
0x126c   : > { %2778 = vmatpush3.bf16.msra.mxu0 %v2881_v30 }
0x126d   : > { %2779 = vmatprep.subr.bf16.mxu0 %v2984_v1 }
0x1270   : > { %2780 = vmatpush3.bf16.msra.mxu0 %v2882_v31 }
0x1271   : > { %2781 = vmatprep.subr.bf16.mxu0 %v2984_v1 }
0x1274   : > { %2782 = vmatpush3.bf16.msra.mxu0 %v2883_v32 }
0x1275   : > { %2783 = vmatprep.subr.bf16.mxu0 %v2984_v1 }
0x1278   : > { %2784 = vmatpush3.bf16.msra.mxu0 %v2884_v33 }
0x1279   : > { %2785 = vmatprep.subr.bf16.mxu0 %v2984_v1 }
0x127c   : > { %2786 = vmatpush3.bf16.msra.mxu0 %v2885_v34 }
0x1332   : > { %v1994_v4 = vpop.f32.mrb[32].mxu0 }
0x1333   : > { %v3441_v6 = vadd.f32 %v1994_v4, %v3348_v36  ;;  %v2761_v7 = vpop.f32.mrb[33].mxu0  ;;  %v2876_v36 = vld [vmem:[%s3577_s14 + $0x10] sm:$0xff]  }
0x1334   : > { %v1997_v8 = vpop.f32.mrb[34].mxu0  ;;  %2764 = vmatpush3.bf16.msra.mxu1 %v2876_v36 }
0x1335   : > { %v2762_v9 = vpop.f32.mrb[35].mxu0  ;;  %v2004_v10 = vsel %vm789_vm1, %v3441_v6, 0.0  ;;  %2765 = vmatprep.subr.bf16.mxu1 %v2984_v1 }
0x1336   : > { %2005 = vadd.xlane.f32.xlu1 %v2004_v10 }
0x1338   : > { %2766 = vmatpush3.bf16.msra.mxu1 %v2877_v16 }
0x1339   : > { %2791 = vmatprep.subr.bf16.mxu1 %v2984_v1 }
0x13c3   : > { %v2006_v11 = vpop.xlane.xlu1 %2005 }
0x13c4   : > { %v2007_v12 = vmul.f32 0.03125, %v2006_v11  ;;  %v2521_v11 = vld [vmem:[%s3581_s18] ss:$0 sm:$0xff] }
0x13c6   : > { %v2008_v13 = vsub.f32 %v3441_v6, %v2007_v12  ;;  %v2522_v12 = vld [vmem:[%s3582_s19] ss:$0 sm:$0xff] }
0x13c8   : > { %v2009_v14 = vmul.f32 %v2008_v13, %v2008_v13 }
0x13ca   : > { %v2010_v15 = vsel %vm789_vm1, %v2009_v14, 0.0 }
0x13cb   : > { %2011 = vadd.xlane.f32.xlu0 %v2010_v15 }
0x1458   : > { %v2012_v20 = vpop.xlane.xlu0 %2011 }
0x1459   : > { %v2013_v21 = vmul.f32 0.03125, %v2012_v20 }
0x145b   : > { %v2014_v22 = vadd.f32 1e-05, %v2013_v21 }
0x145d   : > { %2914 = vrsqrt.f32 %v2014_v22 }
0x1467   : > { %v2915_v23 = vpop.eup %2914 }
0x1468   : > { %v2016_v25 = vmul.f32 %v2915_v23, %v2008_v13 }
0x146a   : > { %v2023_v27 = vmul.f32 %v2483_v24, %v2016_v25 }
0x146c   : > { %v2030_v28 = vadd.f32 %v2484_v26, %v2023_v27 }
0x146e   : > { %v2031_v29 = vpack.c.bf16 %v2030_v28, %v2030_v28 }
0x1470   : > { %2768 = vmatmul.mubr.msk.bf16.vlgmr.msra.gmra.mrb[40].mxu1 %vm758_vm2, %v2031_v29 }
0x1471   : > { %2795 = vmatprep.mubr.msk.bf16.mxu1 %vm2985_vm0, %v2984_v1  ;;  %2792 = vmatpush3.bf16.msra.mxu1 %v2886_v35 }
0x1472   : > { %2793 = vmatprep.subr.bf16.mxu1 %v2984_v1 }
0x1475   : > { %2794 = vmatpush3.bf16.msra.mxu1 %v2887_v47 }
0x1543   : > { %v2086_v37 = vpop.f32.mrb[40].mxu1 }
0x1544   : > { %v2093_v38 = vmul.f32 0.70710677, %v2086_v37  ;;  %v2769_v39 = vpop.f32.mrb[41].mxu1  ;;  %v2092_v43 = vmul.f32 0.5, %v2086_v37 }
0x1545   : > { %v2089_v40 = vpop.f32.mrb[42].mxu1 }
0x1546   : > { %2916 = verf.f32 %v2093_v38  ;;  %v2770_v41 = vpop.f32.mrb[43].mxu1 }
0x1550   : > { %v2917_v42 = vpop.eup %2916 }
0x1551   : > { %v2095_v44 = vadd.f32 1.0, %v2917_v42 }
0x1553   : > { %v2096_v45 = vmul.f32 %v2095_v44, %v2092_v43 }
0x1555   : > { %v2097_v46 = vpack.c.bf16 %v2096_v45, %v2096_v45 }
0x1557   : > { %2788 = vmatmul.mubr.bf16.vlgmr.msra.gmra.mrb[36].mxu0 %v2097_v46 }
0x162a   : > { %v2197_v48 = vpop.f32.mrb[36].mxu0 }
0x162b   : > { %v2198_v49 = vadd.f32 %v2197_v48, %v3441_v6  ;;  %v2789_v50 = vpop.f32.mrb[37].mxu0 }
0x162c   : > { %v2200_v51 = vpop.f32.mrb[38].mxu0 }
0x162d   : > { %v2203_v53 = vpack.c.bf16 %v2198_v49, %v2198_v49  ;;  %v2790_v54 = vpop.f32.mrb[39].mxu0 }
0x162f   : > { %2796 = vmatmul.mubr.msk.bf16.vlgmr.msra.gmra.mrb[44].mxu1 %vm758_vm2, %v2203_v53 }
0x1702   : > { %v2264_v56 = vpop.f32.mrb[44].mxu1 }
0x1703   : > { %v2265_v57 = vadd.f32 %v2516_v55, %v2264_v56  ;;  %v2797_v58 = vpop.f32.mrb[45].mxu1 }
0x1704   : > { %v2267_v59 = vpop.f32.mrb[46].mxu1 }
0x1705   : > { %v2798_v60 = vpop.f32.mrb[47].mxu1  ;;  %v2276_v61 = vsel %vm2275_vm7, %v2265_v57, 0.0 }
0x1706   : > { %2277 = vadd.xlane.f32.xlu0 %v2276_v61 }
0x1793   : > { %v2278_v0 = vpop.xlane.xlu0 %2277 }
0x1794   : > { %v2279_v52 = vmul.f32 0.03125, %v2278_v0 }
0x1796   : > { %v2280_v3 = vsub.f32 %v2265_v57, %v2279_v52 }
0x1798   : > { %v2281_v5 = vmul.f32 %v2520_v2, %v2280_v3 }
0x179a   : > { %v2282_v4 = vmul.f32 %v2281_v5, %v2281_v5 }
0x179c   : > { %v2283_v6 = vsel %vm2275_vm7, %v2282_v4, 0.0 }
0x179d   : > { %2284 = vadd.xlane.f32.xlu1 %v2283_v6 }
0x182a   : > { %v2285_v7 = vpop.xlane.xlu1 %2284 }
0x182b   : > { %v2286_v8 = vmul.f32 0.03125, %v2285_v7 }
0x182d   : > { %v2287_v9 = vadd.f32 1e-05, %v2286_v8 }
0x182f   : > { %2918 = vrsqrt.f32 %v2287_v9 }
0x1839   : > { %v2919_v10 = vpop.eup %2918 }
0x183a   : > { %v2289_v1 = vmul.f32 %v2919_v10, %v2281_v5 }
0x183c   : > { %v2297_v13 = vmul.f32 %v2521_v11, %v2289_v1 }
0x183e   : > { %v2305_v14 = vadd.f32 %v2522_v12, %v2297_v13 }
0x1840   : > { %2306 = vst [vmem:[%s633_s3] sm:$0xf] %v2305_v14 }
0x1841   : > { %2933 = shalt.err (!%p2930_p3)
}
0x1842   : > { %s2934_s0 = scalar_lea.hbm %s3521_s5, 64  ;;  %s2938_s24 = scalar_lea.hbm %s3583_s20, 128 }
0x1843   : > { %p2935_p4 = scmp.ne.s32.totalorder %s3521_s5, %s2934_s0  ;;  %p2939_p9 = scmp.lt.u32.totalorder %s3521_s5, %s3583_s20 }
0x1844   : > { %p2940_p10 = scmp.lt.u32.totalorder %s2938_s24, %s2934_s0  ;;  %p2942_p12 = scmp.lt.u32.totalorder %s2934_s0, %s3521_s5 }
0x1845   : > { %p2936_p7 = pnand %p2935_p4, %p3132_p5 }
0x1846   : > { %p2941_p11 = por %p2940_p10, %p2939_p9 }
0x1847   : > { %p2937_p8 = pneg %p2936_p7 }
0x1848   : > { %p2943_p13 = por %p2942_p12, %p2941_p11 }
0x184a   : > { %p2944_p0 = pnand %p2943_p13, %p2937_p8 }
0x184c   : > { %2947 = shalt.err (!%p2944_p0)
}
0x184d   : > { %2799 = dma.vmem_to_hbm [thread:$0]  (%p3132_p5), %s3523_s1, 64, %s3521_s5, %s2308_s27  }
0x184e PF: > { %s3613_s30 = sld [smem:[#allocation7_spill]]  ;;  %s3614_s2 = sld [smem:[#allocation5_spill]] }
0x1854   : > { %p2805_p1 = scmp.ge.s32.totalorder %s3613_s30, 2  ;;  %s2333_s28 = sand.u32 1, %s3614_s2  }
0x1855   : > { %s2334_s26 = scalar_lea.sflag [#allocation3], %s2333_s28 }
0x1856   : > { %p2802_p2 = pnand %p2805_p1, %p3136_p6 }
0x1858   : > { %2965 = dma.done.wait (!%p2802_p2), %s2334_s26, 64  }
0x1859   : > { %2967 = vsyncadd (!%p2802_p2), %s2334_s26, 4294967232  ;;  %s3616_s24 = sld [smem:[#allocation8_spill]]  ;;  %s3617_s0 = sld [smem:[#allocation6_spill]] }
0x185a   : > { %s3618_s23 = sld [smem:[#allocation9_spill]]  ;;  %s3619_s1 = smov %s2974_s22 }
0x185f   : > { %p30_p3 = scmp.ge.s32.totalorder %s3616_s24, 4   ;;  %s3620_s22 = smov %s3617_s0 }
0x1861   :  { %32 = sbr.rel (!%p30_p3) target bundleno = 10 (0xa), region = 150 }
0x1868   :  { %2339 = vsyncpa [#allocation3], 1 }
0x1869   :  { %2341 = vsyncpa [#allocation3 + $0x1], 1 }

</bundles_post_ra>
